<compile_context>
chip_gen: v5e
topology: v5e:2x2
jax: 0.10.0
libtpu: 0.0.40
codegen_flags: <defaults>
</compile_context>

<pallas_src>
import functools

import jax
import jax.numpy as jnp
import numpy as np
from jax.experimental import pallas as pl
from jax.experimental.pallas import tpu as pltpu


def _round_up(x, m):
    return ((x + m - 1) // m) * m


# ---------------------------------------------------------------------------
# Single fused kernel: conv+ReLU+pool (one matmul + max) -> 5x [Linear+ReLU].
# ---------------------------------------------------------------------------
def cnn1d_fused_kernel(x_ref, wc_ref,
                       w1_ref, b1_ref, w2_ref, b2_ref, w3_ref, b3_ref,
                       w4_ref, b4_ref, w5_ref, b5_ref, out_ref, *, flp_pad):
    # x_ref  : (N_pad, CL_pad)           flattened input, channel-major
    #                                    (c*L + t); column CL holds 1.0 so the
    #                                    conv bias row of wc is picked up.
    # wc_ref : (CL_pad, 2*FLp_pad)       fused [W_even | W_odd] Toeplitz conv
    #                                    weights (bias folded into row CL).
    # wX/bX  : FC weights (din, dout) / biases (1, dout), biases in f32.
    # out_ref: (N_pad, out_dim)
    x = x_ref[...]
    r = jnp.dot(x, wc_ref[...], preferred_element_type=jnp.float32)
    # Split at flp_pad (multiple of 128 lanes) -> free slices.
    conv_e = r[:, :flp_pad]
    conv_o = r[:, flp_pad:]
    # ReLU then MaxPool1d(2)  ==  relu(max(even, odd)).  Stays in vregs, is
    # already in PyTorch's flattened (f*Lp + l) order, lane-dense.
    h = jnp.maximum(jnp.maximum(conv_e, conv_o), 0.0)

    for w_ref, b_ref in ((w1_ref, b1_ref), (w2_ref, b2_ref), (w3_ref, b3_ref),
                         (w4_ref, b4_ref), (w5_ref, b5_ref)):
        h = jnp.maximum(
            jnp.dot(h.astype(w_ref.dtype), w_ref[...],
                    preferred_element_type=jnp.float32) + b_ref[...],
            0.0)
    out_ref[...] = h.astype(out_ref.dtype)


# ---------------------------------------------------------------------------
# One-time weight transform (run ONCE, outside the per-call jit).
# ---------------------------------------------------------------------------
def prepare_params(params, seq_len, matmul_dtype=jnp.bfloat16):
    conv_w = params["conv_w"].astype(jnp.float32)   # (F, C, K) PyTorch layout
    conv_b = params["conv_b"].astype(jnp.float32)   # (F,)
    F, C, K = conv_w.shape
    L = seq_len
    L_out = L - K + 1
    Lp = L_out // 2                                 # MaxPool1d(2) floor

    CL, FLp = C * L, F * Lp
    CL_pad = _round_up(CL + 1, 128)                 # +1 row carries conv bias
    FLp_pad = _round_up(FLp, 128)                   # 232 -> 256

    # Fold Conv1d + MaxPool into a Toeplitz matrix per pooling tap:
    #   W_p[c*L + t, f*Lp + l] = sum_k conv_w[f, c, k] * [t == 2*l + p + k]
    t_idx = jnp.arange(L)
    l_idx = jnp.arange(Lp)
    k_idx = jnp.arange(K)

    def build_half(p):
        sel = (t_idx[None, :, None] ==
               (2 * l_idx[None, None, :] + p + k_idx[:, None, None])
               ).astype(jnp.float32)                       # (K, L, Lp)
        w4 = jnp.einsum("fck,ktl->ctfl", conv_w, sel)      # (C, L, F, Lp)
        half = w4.reshape(CL, FLp)
        # Row CL = conv bias (flattened order b[f*Lp + l] = conv_b[f]); the
        # matching 1.0 lives in x_flat[:, CL].
        bias_row = jnp.repeat(conv_b, Lp).reshape(1, FLp)
        half = jnp.concatenate([half, bias_row], axis=0)   # (CL+1, FLp)
        return jnp.pad(half, ((0, CL_pad - CL - 1), (0, FLp_pad - FLp)))

    wc = jnp.concatenate([build_half(0), build_half(1)],
                         axis=1).astype(matmul_dtype)      # (CL_pad, 2*FLp_pad)

    prepared = {"wc": wc}
    # FC weights: (dout, din) -> (din, dout); FC1's input rows padded to FLp_pad
    # (padded conv lanes are exactly zero, so this is numerically exact).
    w1 = jnp.pad(params["w1"].T.astype(jnp.float32),
                 ((0, FLp_pad - FLp), (0, 0)))
    prepared["w1"] = w1.astype(matmul_dtype)
    for i in range(2, 6):
        prepared[f"w{i}"] = params[f"w{i}"].T.astype(matmul_dtype)
    for i in range(1, 6):
        prepared[f"b{i}"] = params[f"b{i}"].reshape(1, -1).astype(jnp.float32)
    return jax.tree_util.tree_map(jax.block_until_ready, prepared)


# ---------------------------------------------------------------------------
# Per-call wrapper: flatten/pad x (tiny) + one pallas_call.
# ---------------------------------------------------------------------------
@jax.jit
def cnn1d_pallas(x_ncl, prepared):
    wc = prepared["wc"]
    fc_ws = [prepared[f"w{i}"] for i in range(1, 6)]
    fc_bs = [prepared[f"b{i}"] for i in range(1, 6)]

    N, C, L = x_ncl.shape
    CL = C * L
    CL_pad = wc.shape[0]
    FLp_pad = wc.shape[1] // 2
    out_dim = fc_bs[-1].shape[1]
    N_pad = _round_up(max(N, 8), 8)       # fill at least one sublane group

    # Flatten channel-major (c*L + t), append the bias column (1.0 multiplies
    # wc's bias row), zero-pad contraction dim and batch rows.
    x_flat = jnp.concatenate(
        [x_ncl.reshape(N, CL).astype(jnp.float32),
         jnp.ones((N, 1), jnp.float32)], axis=1)           # (N, CL+1)
    x_flat = jnp.pad(x_flat, ((0, N_pad - N), (0, CL_pad - CL - 1)))
    x_flat = x_flat.astype(wc.dtype)

    kernel_inputs = [x_flat, wc]
    for w, b in zip(fc_ws, fc_bs):
        kernel_inputs += [w, b]

    flops = 2 * N_pad * (CL_pad * 2 * FLp_pad
                         + sum(int(w.shape[0]) * int(w.shape[1]) for w in fc_ws))
    bytes_accessed = (sum(a.size * a.dtype.itemsize for a in kernel_inputs)
                      + N_pad * out_dim * 4)

    # Total residency ~0.9 MB (bf16) / ~1.7 MB (f32): far under VMEM on
    # v5e/v6e (128 MiB) and v7x (64 MiB) -> no grid / blocking needed.
    vmem = pl.BlockSpec(memory_space=pltpu.MemorySpace.VMEM)
    out = pl.pallas_call(
        functools.partial(cnn1d_fused_kernel, flp_pad=FLp_pad),
        out_shape=jax.ShapeDtypeStruct((N_pad, out_dim), jnp.float32),
        in_specs=[vmem] * len(kernel_inputs),
        out_specs=vmem,
        cost_estimate=pl.CostEstimate(flops=flops, transcendentals=0,
                                      bytes_accessed=bytes_accessed),
    )(*kernel_inputs)
    return out[:N]


# ---------------------------------------------------------------------------
# Pure-JAX reference (PyTorch semantics) for verification.
# ---------------------------------------------------------------------------
def reference_forward(x_ncl, params):
    N, C, L = x_ncl.shape
    conv_w, conv_b = params["conv_w"], params["conv_b"]
    F, _, K = conv_w.shape
    L_out = L - K + 1
    acc = jnp.zeros((N, F, L_out), jnp.float32)
    for k in range(K):
        acc = acc + jnp.einsum("ncl,fc->nfl",
                               x_ncl[:, :, k:k + L_out], conv_w[:, :, k])
    acc = jax.nn.relu(acc + conv_b[None, :, None])
    Lp = L_out // 2
    pooled = acc[:, :, :2 * Lp].reshape(N, F, Lp, 2).max(axis=-1)
    h = pooled.reshape(N, F * Lp)
    for i in range(1, 6):
        h = jax.nn.relu(h @ params[f"w{i}"].T + params[f"b{i}"])
    return h


# ---------------------------------------------------------------------------
# Deterministic parameter init (mimics PyTorch default uniform init shapes).
# ---------------------------------------------------------------------------
def init_params(key, input_dim, num_filters, kernel_size, output_dim):
    fc_in = num_filters * 29
    fc_dims = [(fc_in, 512), (512, 256), (256, 128), (128, 32),
               (32, output_dim)]
    keys = jax.random.split(key, 2 + 2 * len(fc_dims))
    params = {}
    bnd = 1.0 / np.sqrt(input_dim * kernel_size)
    params["conv_w"] = jax.random.uniform(
        keys[0], (num_filters, input_dim, kernel_size),
        minval=-bnd, maxval=bnd, dtype=jnp.float32)
    params["conv_b"] = jax.random.uniform(
        keys[1], (num_filters,), minval=-bnd, maxval=bnd, dtype=jnp.float32)
    for i, (din, dout) in enumerate(fc_dims, start=1):
        b = 1.0 / np.sqrt(din)
        params[f"w{i}"] = jax.random.uniform(
            keys[2 * i], (dout, din), minval=-b, maxval=b, dtype=jnp.float32)
        params[f"b{i}"] = jax.random.uniform(
            keys[2 * i + 1], (dout,), minval=-b, maxval=b, dtype=jnp.float32)
    return params


if __name__ == "__main__":
    # Shapes consistent with the module: MaxPool1d(2)(Conv1d out) length must
    # be 29  ->  (L - kernel_size + 1) // 2 = 29  ->  L = 60, K = 3.
    batch, input_dim, num_filters, kernel_size, output_dim, L = 2, 4, 8, 3, 10, 60

    key = jax.random.PRNGKey(0)
    kx, kp = jax.random.split(key)
    x = jax.random.normal(kx, (batch, input_dim, L), dtype=jnp.float32)
    params = init_params(kp, input_dim, num_filters, kernel_size, output_dim)

    ref = reference_forward(x, params)

    # f32 weight path: tight numerical check of the fused kernel.
    prep_f32 = prepare_params(params, L, matmul_dtype=jnp.float32)
    out_f32 = jax.block_until_ready(cnn1d_pallas(x, prep_f32))
    np.testing.assert_allclose(np.asarray(out_f32), np.asarray(ref),
                               rtol=1e-4, atol=1e-5)

    # bf16 weight path (production default on all gens): halves weight DMA;
    # looser tolerance as expected for bf16 matmuls with f32 accumulation.
    prep_bf16 = prepare_params(params, L)
    out_bf16 = jax.block_until_ready(cnn1d_pallas(x, prep_bf16))
    np.testing.assert_allclose(np.asarray(out_bf16), np.asarray(ref),
                               rtol=5e-2, atol=2e-2)

    print("KERNEL_OK")
</pallas_src>

<mosaic_0001>
module attributes {stable_mosaic.version = 11 : i64} {
  func.func @cnn1d_fused_kernel(%arg0: memref<8x256xf32, #tpu.memory_space<vmem>>, %arg1: memref<256x512xf32, #tpu.memory_space<vmem>>, %arg2: memref<256x512xf32, #tpu.memory_space<vmem>>, %arg3: memref<1x512xf32, #tpu.memory_space<vmem>>, %arg4: memref<512x256xf32, #tpu.memory_space<vmem>>, %arg5: memref<1x256xf32, #tpu.memory_space<vmem>>, %arg6: memref<256x128xf32, #tpu.memory_space<vmem>>, %arg7: memref<1x128xf32, #tpu.memory_space<vmem>>, %arg8: memref<128x32xf32, #tpu.memory_space<vmem>>, %arg9: memref<1x32xf32, #tpu.memory_space<vmem>>, %arg10: memref<32x10xf32, #tpu.memory_space<vmem>>, %arg11: memref<1x10xf32, #tpu.memory_space<vmem>>, %arg12: memref<8x10xf32, #tpu.memory_space<vmem>>) attributes {dimension_semantics = [], scalar_prefetch = 0 : i64, scratch_operands = 0 : i64, tpu.core_type = #tpu.core_type<tc>} {
    %c0 = arith.constant 0 : index
    %c0_0 = arith.constant 0 : index
    %0 = vector.load %arg0[%c0, %c0_0] : memref<8x256xf32, #tpu.memory_space<vmem>>, vector<8x256xf32>
    %c0_1 = arith.constant 0 : index
    %c0_2 = arith.constant 0 : index
    %1 = vector.load %arg1[%c0_1, %c0_2] : memref<256x512xf32, #tpu.memory_space<vmem>>, vector<256x512xf32>
    %cst = arith.constant dense<0.000000e+00> : vector<8x512xf32>
    %2 = tpu.matmul %0, %1, %cst {dimension_numbers = #tpu.dot_dimension_numbers<[1], [0], [0], [1], [0, 0, 1, 1], [], []>} : vector<8x256xf32>, vector<256x512xf32>, vector<8x512xf32> -> vector<8x512xf32>
    %3 = vector.extract_strided_slice %2 {offsets = [0, 0], sizes = [8, 256], strides = [1, 1]} : vector<8x512xf32> to vector<8x256xf32>
    %4 = vector.extract_strided_slice %2 {offsets = [0, 256], sizes = [8, 256], strides = [1, 1]} : vector<8x512xf32> to vector<8x256xf32>
    %5 = arith.maximumf %3, %4 : vector<8x256xf32>
    %cst_3 = arith.constant 0.000000e+00 : f32
    %6 = vector.broadcast %cst_3 : f32 to vector<8x256xf32>
    %7 = arith.maximumf %5, %6 : vector<8x256xf32>
    %c0_4 = arith.constant 0 : index
    %c0_5 = arith.constant 0 : index
    %8 = vector.load %arg2[%c0_4, %c0_5] : memref<256x512xf32, #tpu.memory_space<vmem>>, vector<256x512xf32>
    %cst_6 = arith.constant dense<0.000000e+00> : vector<8x512xf32>
    %9 = tpu.matmul %7, %8, %cst_6 {dimension_numbers = #tpu.dot_dimension_numbers<[1], [0], [0], [1], [0, 0, 1, 1], [], []>} : vector<8x256xf32>, vector<256x512xf32>, vector<8x512xf32> -> vector<8x512xf32>
    %c0_7 = arith.constant 0 : index
    %c0_8 = arith.constant 0 : index
    %10 = vector.load %arg3[%c0_7, %c0_8] : memref<1x512xf32, #tpu.memory_space<vmem>>, vector<1x512xf32>
    %11 = vector.broadcast %10 : vector<1x512xf32> to vector<8x512xf32>
    %12 = arith.addf %9, %11 : vector<8x512xf32>
    %cst_9 = arith.constant 0.000000e+00 : f32
    %13 = vector.broadcast %cst_9 : f32 to vector<8x512xf32>
    %14 = arith.maximumf %12, %13 : vector<8x512xf32>
    %c0_10 = arith.constant 0 : index
    %c0_11 = arith.constant 0 : index
    %15 = vector.load %arg4[%c0_10, %c0_11] : memref<512x256xf32, #tpu.memory_space<vmem>>, vector<512x256xf32>
    %cst_12 = arith.constant dense<0.000000e+00> : vector<8x256xf32>
    %16 = tpu.matmul %14, %15, %cst_12 {dimension_numbers = #tpu.dot_dimension_numbers<[1], [0], [0], [1], [0, 0, 1, 1], [], []>} : vector<8x512xf32>, vector<512x256xf32>, vector<8x256xf32> -> vector<8x256xf32>
    %c0_13 = arith.constant 0 : index
    %c0_14 = arith.constant 0 : index
    %17 = vector.load %arg5[%c0_13, %c0_14] : memref<1x256xf32, #tpu.memory_space<vmem>>, vector<1x256xf32>
    %18 = vector.broadcast %17 : vector<1x256xf32> to vector<8x256xf32>
    %19 = arith.addf %16, %18 : vector<8x256xf32>
    %cst_15 = arith.constant 0.000000e+00 : f32
    %20 = vector.broadcast %cst_15 : f32 to vector<8x256xf32>
    %21 = arith.maximumf %19, %20 : vector<8x256xf32>
    %c0_16 = arith.constant 0 : index
    %c0_17 = arith.constant 0 : index
    %22 = vector.load %arg6[%c0_16, %c0_17] : memref<256x128xf32, #tpu.memory_space<vmem>>, vector<256x128xf32>
    %cst_18 = arith.constant dense<0.000000e+00> : vector<8x128xf32>
    %23 = tpu.matmul %21, %22, %cst_18 {dimension_numbers = #tpu.dot_dimension_numbers<[1], [0], [0], [1], [0, 0, 1, 1], [], []>} : vector<8x256xf32>, vector<256x128xf32>, vector<8x128xf32> -> vector<8x128xf32>
    %c0_19 = arith.constant 0 : index
    %c0_20 = arith.constant 0 : index
    %24 = vector.load %arg7[%c0_19, %c0_20] : memref<1x128xf32, #tpu.memory_space<vmem>>, vector<1x128xf32>
    %25 = vector.broadcast %24 : vector<1x128xf32> to vector<8x128xf32>
    %26 = arith.addf %23, %25 : vector<8x128xf32>
    %cst_21 = arith.constant 0.000000e+00 : f32
    %27 = vector.broadcast %cst_21 : f32 to vector<8x128xf32>
    %28 = arith.maximumf %26, %27 : vector<8x128xf32>
    %c0_22 = arith.constant 0 : index
    %c0_23 = arith.constant 0 : index
    %29 = vector.load %arg8[%c0_22, %c0_23] : memref<128x32xf32, #tpu.memory_space<vmem>>, vector<128x32xf32>
    %cst_24 = arith.constant dense<0.000000e+00> : vector<8x32xf32>
    %30 = tpu.matmul %28, %29, %cst_24 {dimension_numbers = #tpu.dot_dimension_numbers<[1], [0], [0], [1], [0, 0, 1, 1], [], []>} : vector<8x128xf32>, vector<128x32xf32>, vector<8x32xf32> -> vector<8x32xf32>
    %c0_25 = arith.constant 0 : index
    %c0_26 = arith.constant 0 : index
    %31 = vector.load %arg9[%c0_25, %c0_26] : memref<1x32xf32, #tpu.memory_space<vmem>>, vector<1x32xf32>
    %32 = vector.broadcast %31 : vector<1x32xf32> to vector<8x32xf32>
    %33 = arith.addf %30, %32 : vector<8x32xf32>
    %cst_27 = arith.constant 0.000000e+00 : f32
    %34 = vector.broadcast %cst_27 : f32 to vector<8x32xf32>
    %35 = arith.maximumf %33, %34 : vector<8x32xf32>
    %c0_28 = arith.constant 0 : index
    %c0_29 = arith.constant 0 : index
    %36 = vector.load %arg10[%c0_28, %c0_29] : memref<32x10xf32, #tpu.memory_space<vmem>>, vector<32x10xf32>
    %cst_30 = arith.constant dense<0.000000e+00> : vector<8x10xf32>
    %37 = tpu.matmul %35, %36, %cst_30 {dimension_numbers = #tpu.dot_dimension_numbers<[1], [0], [0], [1], [0, 0, 1, 1], [], []>} : vector<8x32xf32>, vector<32x10xf32>, vector<8x10xf32> -> vector<8x10xf32>
    %c0_31 = arith.constant 0 : index
    %c0_32 = arith.constant 0 : index
    %38 = vector.load %arg11[%c0_31, %c0_32] : memref<1x10xf32, #tpu.memory_space<vmem>>, vector<1x10xf32>
    %39 = vector.broadcast %38 : vector<1x10xf32> to vector<8x10xf32>
    %40 = arith.addf %37, %39 : vector<8x10xf32>
    %cst_33 = arith.constant 0.000000e+00 : f32
    %41 = vector.broadcast %cst_33 : f32 to vector<8x10xf32>
    %42 = arith.maximumf %40, %41 : vector<8x10xf32>
    %c0_34 = arith.constant 0 : index
    %c0_35 = arith.constant 0 : index
    %43 = vector.load %arg12[%c0_34, %c0_35] : memref<8x10xf32, #tpu.memory_space<vmem>>, vector<8x10xf32>
    tpu.vector_store %arg12[%c0_34, %c0_35], %42 {strides = array<i32>} : memref<8x10xf32, #tpu.memory_space<vmem>>, vector<8x10xf32>,
    return
  }
}

</mosaic_0001>

<bundles_post_ra>
// kernel: cnn1d_pallas.1
= control target key start
LH: loop header
LB: loop body
LE: loop exit
PB: predicated region body
PF: predicated region fallthrough
CT: control target
= control target key end

     0   :  { %17 = vsyncpa [#allocation3], 0  ;;  %s1443_s0 = inlined_call_operand.vmem [shape: f32[8,256], index: 0, kind: input, shape index: {}]   ;;  %s1444_s1 = inlined_call_operand.hbm [shape: f32[256,512], index: 1, kind: input, shape index: {}]   ;;  %s1445_s2 = inlined_call_operand.hbm [shape: f32[256,512], index: 2, kind: input, shape index: {}]   ;;  %s1446_s3 = inlined_call_operand.vmem [shape: f32[1,512], index: 3, kind: input, shape index: {}]   ;;  %s1447_s4 = inlined_call_operand.hbm [shape: f32[512,256], index: 4, kind: input, shape index: {}]   ;;  %s1448_s5 = inlined_call_operand.vmem [shape: f32[1,256], index: 5, kind: input, shape index: {}]   ;;  %s1449_s6 = inlined_call_operand.hbm [shape: f32[256,128], index: 6, kind: input, shape index: {}]   ;;  %s1450_s7 = inlined_call_operand.vmem [shape: f32[1,128], index: 7, kind: input, shape index: {}]   ;;  %s1451_s8 = inlined_call_operand.vmem [shape: f32[128,32], index: 8, kind: input, shape index: {}]   ;;  %s1452_s9 = inlined_call_operand.vmem [shape: f32[1,32], index: 9, kind: input, shape index: {}]   ;;  %s1453_s10 = inlined_call_operand.vmem [shape: f32[32,10], index: 10, kind: input, shape index: {}]   ;;  %s1454_s11 = inlined_call_operand.vmem [shape: f32[1,10], index: 11, kind: input, shape index: {}]   ;;  %s1455_s12 = inlined_call_operand.vmem [shape: f32[8,10], index: 12, kind: output, shape index: {}]  }
   0x1   :  { %18 = vsyncpa [#allocation5], 0 }
   0x2   :  { %19 = vsyncpa [#allocation8], 0  ;;  %s39_s23 = sshll.u32 %s1445_s2, 4  ;;  %s1272_s24 = smov [#allocation4]   ;;  %s40_s23 = int_to_ptr.hbm [resolvable:$true] %s39_s23 }
   0x3   :  { %s41_s25 = sshll.u32 %s1272_s24, 4  ;;  %s26_s28 = sshll.u32 %s1444_s1, 4  ;;  %s42_s25 = int_to_ptr.vmem [resolvable:$true] %s41_s25  ;;  %s27_s28 = int_to_ptr.hbm [resolvable:$true] %s26_s28 }
   0x4   :  { %s1273_s29 = smov 512   ;;  %s1274_s30 = smov 32  }
   0x5   :  { %47 = dma.hbm_to_vmem [thread:$0]  %s40_s23, 16384, %s42_s25, [#allocation5], %s1273_s29, %s1273_s29, %s1274_s30  }
   0x6   :  { %s1275_s13 = smov [#allocation2]   ;;  %s54_s17 = sshll.u32 %s1447_s4, 4  ;;  %s55_s17 = int_to_ptr.hbm [resolvable:$true] %s54_s17 }
   0x7   :  { %s28_s14 = sshll.u32 %s1275_s13, 4  ;;  %s1276_s2 = smov [#allocation6]   ;;  %s29_s14 = int_to_ptr.vmem [resolvable:$true] %s28_s14 }
   0x8   :  { %34 = dma.hbm_to_vmem [thread:$0]  %s27_s28, 16384, %s29_s14, [#allocation3], %s1273_s29, %s1273_s29, %s1274_s30  }
   0x9   :  { %s56_s18 = sshll.u32 %s1276_s2, 4  ;;  %s69_s1 = sshll.u32 %s1449_s6, 4  ;;  %s57_s18 = int_to_ptr.vmem [resolvable:$true] %s56_s18  ;;  %s70_s1 = int_to_ptr.hbm [resolvable:$true] %s69_s1 }
   0xa   :  { %s1277_s21 = smov 256   ;;  %s1278_s22 = smov 16  }
   0xb   :  { %62 = dma.hbm_to_vmem [thread:$0]  %s55_s17, 16384, %s57_s18, [#allocation5], %s1277_s21, %s1277_s21, %s1278_s22  }
   0xc   :  { %s1279_s23 = smov [#allocation7]   ;;  %s1280_s25 = smov 128  }
   0xd   :  { %s71_s24 = sshll.u32 %s1279_s23, 4  ;;  %s1281_s26 = smov 8   ;;  %s72_s24 = int_to_ptr.vmem [resolvable:$true] %s71_s24 }
   0xe   :  { %77 = dma.hbm_to_vmem [thread:$0]  %s70_s1, 4096, %s72_s24, [#allocation8], %s1280_s25, %s1280_s25, %s1281_s26  }
   0xf   :  { %1266 = dma.done.wait [#allocation3], 16384  }
  0x10   :  { %1267 = vsyncadd [#allocation3], 4294950912 }
  0x11   :  { %1268 = dma.done.wait [#allocation5], 32768  }
  0x12   :  { %1269 = vsyncadd [#allocation5], 4294934528 }
  0x13   :  { %1270 = dma.done.wait [#allocation8], 4096  }
  0x14   :  { %1271 = vsyncadd [#allocation8], 4294963200  ;;  %v166_v0 = vld [vmem:[#allocation2 + $0x1e0] sm:$0xff]  ;;  %v167_v2 = vld [vmem:[#allocation2 + $0x1e8] sm:$0xff]  ;;  %vm1122_vm0 = vcmask 261120   ;;  %vm1147_vm1 = vcmask 80896  }
  0x15   :  { %v230_v1 = vld [vmem:[#allocation2 + $0x3e0] sm:$0xff]  ;;  %234 = vmatpush.msra.mxu0 %v166_v0  ;;  %v231_v3 = vld [vmem:[#allocation2 + $0x3e8] sm:$0xff]  ;;  %274 = vmatpush.msra.mxu2 %v167_v2  ;;  %v168_v0 = vld [vmem:[#allocation2 + $0x1f0] sm:$0xff] }
  0x16   :  { %254 = vmatpush.msra.mxu1 %v230_v1  ;;  %v162_v4 = vld [vmem:[#allocation2 + $0x1c0] sm:$0xff]  ;;  %294 = vmatpush.msra.mxu3 %v231_v3  ;;  %v163_v6 = vld [vmem:[#allocation2 + $0x1c8] sm:$0xff]  ;;  %v232_v1 = vld [vmem:[#allocation2 + $0x3f0] sm:$0xff] }
  0x17   :  { %v226_v5 = vld [vmem:[#allocation2 + $0x3c0] sm:$0xff]  ;;  %v227_v7 = vld [vmem:[#allocation2 + $0x3c8] sm:$0xff]  ;;  %235 = vmatpush.msra.mxu0 %v162_v4  ;;  %275 = vmatpush.msra.mxu2 %v163_v6  ;;  %v169_v2 = vld [vmem:[#allocation2 + $0x1f8] sm:$0xff] }
  0x18   :  { %v158_v8 = vld [vmem:[#allocation2 + $0x1a0] sm:$0xff]  ;;  %255 = vmatpush.msra.mxu1 %v226_v5  ;;  %v159_v10 = vld [vmem:[#allocation2 + $0x1a8] sm:$0xff]  ;;  %295 = vmatpush.msra.mxu3 %v227_v7  ;;  %v233_v3 = vld [vmem:[#allocation2 + $0x3f8] sm:$0xff] }
  0x19   :  { %v222_v9 = vld [vmem:[#allocation2 + $0x3a0] sm:$0xff]  ;;  %v223_v11 = vld [vmem:[#allocation2 + $0x3a8] sm:$0xff]  ;;  %236 = vmatpush.msra.mxu0 %v158_v8  ;;  %276 = vmatpush.msra.mxu2 %v159_v10  ;;  %v164_v4 = vld [vmem:[#allocation2 + $0x1d0] sm:$0xff] }
  0x1a   :  { %v154_v12 = vld [vmem:[#allocation2 + $0x180] sm:$0xff]  ;;  %256 = vmatpush.msra.mxu1 %v222_v9  ;;  %v155_v14 = vld [vmem:[#allocation2 + $0x188] sm:$0xff]  ;;  %296 = vmatpush.msra.mxu3 %v223_v11  ;;  %v228_v5 = vld [vmem:[#allocation2 + $0x3d0] sm:$0xff] }
  0x1b   :  { %v218_v13 = vld [vmem:[#allocation2 + $0x380] sm:$0xff]  ;;  %v219_v15 = vld [vmem:[#allocation2 + $0x388] sm:$0xff]  ;;  %237 = vmatpush.msra.mxu0 %v154_v12  ;;  %277 = vmatpush.msra.mxu2 %v155_v14  ;;  %v165_v6 = vld [vmem:[#allocation2 + $0x1d8] sm:$0xff] }
  0x1c   :  { %v150_v16 = vld [vmem:[#allocation2 + $0x160] sm:$0xff]  ;;  %257 = vmatpush.msra.mxu1 %v218_v13  ;;  %v151_v18 = vld [vmem:[#allocation2 + $0x168] sm:$0xff]  ;;  %297 = vmatpush.msra.mxu3 %v219_v15  ;;  %v229_v7 = vld [vmem:[#allocation2 + $0x3d8] sm:$0xff] }
  0x1d   :  { %v214_v17 = vld [vmem:[#allocation2 + $0x360] sm:$0xff]  ;;  %v215_v19 = vld [vmem:[#allocation2 + $0x368] sm:$0xff]  ;;  %238 = vmatpush.msra.mxu0 %v150_v16  ;;  %278 = vmatpush.msra.mxu2 %v151_v18  ;;  %v160_v8 = vld [vmem:[#allocation2 + $0x1b0] sm:$0xff] }
  0x1e   :  { %v146_v20 = vld [vmem:[#allocation2 + $0x140] sm:$0xff]  ;;  %258 = vmatpush.msra.mxu1 %v214_v17  ;;  %v147_v22 = vld [vmem:[#allocation2 + $0x148] sm:$0xff]  ;;  %298 = vmatpush.msra.mxu3 %v215_v19  ;;  %v224_v9 = vld [vmem:[#allocation2 + $0x3b0] sm:$0xff] }
  0x1f   :  { %v210_v21 = vld [vmem:[#allocation2 + $0x340] sm:$0xff]  ;;  %v211_v23 = vld [vmem:[#allocation2 + $0x348] sm:$0xff]  ;;  %239 = vmatpush.msra.mxu0 %v146_v20  ;;  %279 = vmatpush.msra.mxu2 %v147_v22  ;;  %v161_v10 = vld [vmem:[#allocation2 + $0x1b8] sm:$0xff] }
  0x20   :  { %v142_v24 = vld [vmem:[#allocation2 + $0x120] sm:$0xff]  ;;  %259 = vmatpush.msra.mxu1 %v210_v21  ;;  %v143_v26 = vld [vmem:[#allocation2 + $0x128] sm:$0xff]  ;;  %299 = vmatpush.msra.mxu3 %v211_v23  ;;  %v225_v11 = vld [vmem:[#allocation2 + $0x3b8] sm:$0xff] }
  0x21   :  { %v206_v25 = vld [vmem:[#allocation2 + $0x320] sm:$0xff]  ;;  %v207_v27 = vld [vmem:[#allocation2 + $0x328] sm:$0xff]  ;;  %240 = vmatpush.msra.mxu0 %v142_v24  ;;  %280 = vmatpush.msra.mxu2 %v143_v26  ;;  %v156_v12 = vld [vmem:[#allocation2 + $0x190] sm:$0xff] }
  0x22   :  { %v138_v28 = vld [vmem:[#allocation2 + $0x100] sm:$0xff]  ;;  %260 = vmatpush.msra.mxu1 %v206_v25  ;;  %v139_v30 = vld [vmem:[#allocation2 + $0x108] sm:$0xff]  ;;  %300 = vmatpush.msra.mxu3 %v207_v27  ;;  %v220_v13 = vld [vmem:[#allocation2 + $0x390] sm:$0xff] }
  0x23   :  { %v202_v29 = vld [vmem:[#allocation2 + $0x300] sm:$0xff]  ;;  %v203_v31 = vld [vmem:[#allocation2 + $0x308] sm:$0xff]  ;;  %241 = vmatpush.msra.mxu0 %v138_v28  ;;  %281 = vmatpush.msra.mxu2 %v139_v30  ;;  %v157_v14 = vld [vmem:[#allocation2 + $0x198] sm:$0xff] }
  0x24   :  { %v134_v32 = vld [vmem:[#allocation2 + $0xe0] sm:$0xff]  ;;  %261 = vmatpush.msra.mxu1 %v202_v29  ;;  %v135_v34 = vld [vmem:[#allocation2 + $0xe8] sm:$0xff]  ;;  %301 = vmatpush.msra.mxu3 %v203_v31  ;;  %v221_v15 = vld [vmem:[#allocation2 + $0x398] sm:$0xff] }
  0x25   :  { %v198_v33 = vld [vmem:[#allocation2 + $0x2e0] sm:$0xff]  ;;  %v199_v35 = vld [vmem:[#allocation2 + $0x2e8] sm:$0xff]  ;;  %242 = vmatpush.msra.mxu0 %v134_v32  ;;  %282 = vmatpush.msra.mxu2 %v135_v34  ;;  %v152_v16 = vld [vmem:[#allocation2 + $0x170] sm:$0xff] }
  0x26   :  { %v130_v36 = vld [vmem:[#allocation2 + $0xc0] sm:$0xff]  ;;  %262 = vmatpush.msra.mxu1 %v198_v33  ;;  %v131_v38 = vld [vmem:[#allocation2 + $0xc8] sm:$0xff]  ;;  %302 = vmatpush.msra.mxu3 %v199_v35  ;;  %v216_v17 = vld [vmem:[#allocation2 + $0x370] sm:$0xff] }
  0x27   :  { %v194_v37 = vld [vmem:[#allocation2 + $0x2c0] sm:$0xff]  ;;  %v195_v39 = vld [vmem:[#allocation2 + $0x2c8] sm:$0xff]  ;;  %243 = vmatpush.msra.mxu0 %v130_v36  ;;  %283 = vmatpush.msra.mxu2 %v131_v38  ;;  %v153_v18 = vld [vmem:[#allocation2 + $0x178] sm:$0xff] }
  0x28   :  { %v126_v40 = vld [vmem:[#allocation2 + $0xa0] sm:$0xff]  ;;  %263 = vmatpush.msra.mxu1 %v194_v37  ;;  %v127_v42 = vld [vmem:[#allocation2 + $0xa8] sm:$0xff]  ;;  %303 = vmatpush.msra.mxu3 %v195_v39  ;;  %v217_v19 = vld [vmem:[#allocation2 + $0x378] sm:$0xff] }
  0x29   :  { %v190_v41 = vld [vmem:[#allocation2 + $0x2a0] sm:$0xff]  ;;  %v191_v43 = vld [vmem:[#allocation2 + $0x2a8] sm:$0xff]  ;;  %244 = vmatpush.msra.mxu0 %v126_v40  ;;  %284 = vmatpush.msra.mxu2 %v127_v42  ;;  %v148_v20 = vld [vmem:[#allocation2 + $0x150] sm:$0xff] }
  0x2a   :  { %v122_v44 = vld [vmem:[#allocation2 + $0x80] sm:$0xff]  ;;  %264 = vmatpush.msra.mxu1 %v190_v41  ;;  %v123_v46 = vld [vmem:[#allocation2 + $0x88] sm:$0xff]  ;;  %304 = vmatpush.msra.mxu3 %v191_v43  ;;  %v212_v21 = vld [vmem:[#allocation2 + $0x350] sm:$0xff] }
  0x2b   :  { %v186_v45 = vld [vmem:[#allocation2 + $0x280] sm:$0xff]  ;;  %v187_v47 = vld [vmem:[#allocation2 + $0x288] sm:$0xff]  ;;  %245 = vmatpush.msra.mxu0 %v122_v44  ;;  %285 = vmatpush.msra.mxu2 %v123_v46  ;;  %v149_v22 = vld [vmem:[#allocation2 + $0x158] sm:$0xff] }
  0x2c   :  { %v118_v48 = vld [vmem:[#allocation2 + $0x60] sm:$0xff]  ;;  %265 = vmatpush.msra.mxu1 %v186_v45  ;;  %v119_v50 = vld [vmem:[#allocation2 + $0x68] sm:$0xff]  ;;  %305 = vmatpush.msra.mxu3 %v187_v47  ;;  %v213_v23 = vld [vmem:[#allocation2 + $0x358] sm:$0xff] }
  0x2d   :  { %v182_v49 = vld [vmem:[#allocation2 + $0x260] sm:$0xff]  ;;  %v183_v51 = vld [vmem:[#allocation2 + $0x268] sm:$0xff]  ;;  %246 = vmatpush.msra.mxu0 %v118_v48  ;;  %286 = vmatpush.msra.mxu2 %v119_v50  ;;  %v144_v24 = vld [vmem:[#allocation2 + $0x130] sm:$0xff] }
  0x2e   :  { %v114_v52 = vld [vmem:[#allocation2 + $0x40] sm:$0xff]  ;;  %266 = vmatpush.msra.mxu1 %v182_v49  ;;  %v115_v54 = vld [vmem:[#allocation2 + $0x48] sm:$0xff]  ;;  %306 = vmatpush.msra.mxu3 %v183_v51  ;;  %v208_v25 = vld [vmem:[#allocation2 + $0x330] sm:$0xff] }
  0x2f   :  { %v178_v53 = vld [vmem:[#allocation2 + $0x240] sm:$0xff]  ;;  %v179_v55 = vld [vmem:[#allocation2 + $0x248] sm:$0xff]  ;;  %247 = vmatpush.msra.mxu0 %v114_v52  ;;  %287 = vmatpush.msra.mxu2 %v115_v54  ;;  %v145_v26 = vld [vmem:[#allocation2 + $0x138] sm:$0xff] }
  0x30   :  { %v110_v56 = vld [vmem:[#allocation2 + $0x20] sm:$0xff]  ;;  %267 = vmatpush.msra.mxu1 %v178_v53  ;;  %v111_v58 = vld [vmem:[#allocation2 + $0x28] sm:$0xff]  ;;  %307 = vmatpush.msra.mxu3 %v179_v55  ;;  %v209_v27 = vld [vmem:[#allocation2 + $0x338] sm:$0xff] }
  0x31   :  { %v174_v57 = vld [vmem:[#allocation2 + $0x220] sm:$0xff]  ;;  %v175_v59 = vld [vmem:[#allocation2 + $0x228] sm:$0xff]  ;;  %248 = vmatpush.msra.mxu0 %v110_v56  ;;  %288 = vmatpush.msra.mxu2 %v111_v58  ;;  %v140_v28 = vld [vmem:[#allocation2 + $0x110] sm:$0xff] }
  0x32   :  { %v106_v60 = vld [vmem:[#allocation2] sm:$0xff]  ;;  %268 = vmatpush.msra.mxu1 %v174_v57  ;;  %v107_v62 = vld [vmem:[#allocation2 + $0x8] sm:$0xff]  ;;  %308 = vmatpush.msra.mxu3 %v175_v59  ;;  %v204_v29 = vld [vmem:[#allocation2 + $0x310] sm:$0xff] }
  0x33   :  { %v170_v61 = vld [vmem:[#allocation2 + $0x200] sm:$0xff]  ;;  %v171_v63 = vld [vmem:[#allocation2 + $0x208] sm:$0xff]  ;;  %249 = vmatpush.msra.mxu0 %v106_v60  ;;  %289 = vmatpush.msra.mxu2 %v107_v62  ;;  %v141_v30 = vld [vmem:[#allocation2 + $0x118] sm:$0xff] }
  0x34   :  { %269 = vmatpush.msra.mxu1 %v170_v61  ;;  %309 = vmatpush.msra.mxu3 %v171_v63  ;;  %v205_v31 = vld [vmem:[#allocation2 + $0x318] sm:$0xff]  ;;  %v136_v32 = vld [vmem:[#allocation2 + $0xf0] sm:$0xff]  ;;  %v104_v48 = vld [vmem:[%s1443_s0] sm:$0xff] }
  0x35   :  { %314 = vmatpush.msrb.mxu0 %v168_v0  ;;  %354 = vmatpush.msrb.mxu2 %v169_v2  ;;  %v200_v33 = vld [vmem:[#allocation2 + $0x2f0] sm:$0xff]  ;;  %v137_v34 = vld [vmem:[#allocation2 + $0xf8] sm:$0xff]  ;;  %v105_v49 = vld [vmem:[%s1443_s0 + $0x8] sm:$0xff] }
  0x36   :  { %334 = vmatpush.msrb.mxu1 %v232_v1  ;;  %374 = vmatpush.msrb.mxu3 %v233_v3  ;;  %v201_v35 = vld [vmem:[#allocation2 + $0x2f8] sm:$0xff]  ;;  %v132_v36 = vld [vmem:[#allocation2 + $0xd0] sm:$0xff]  ;;  %v458_v2 = vld [vmem:[#allocation4 + $0x1e0] sm:$0xff] }
  0x37   :  { %315 = vmatpush.msrb.mxu0 %v164_v4  ;;  %355 = vmatpush.msrb.mxu2 %v165_v6  ;;  %v196_v37 = vld [vmem:[#allocation2 + $0x2d0] sm:$0xff]  ;;  %v133_v38 = vld [vmem:[#allocation2 + $0xd8] sm:$0xff]  ;;  %v459_v3 = vld [vmem:[#allocation4 + $0x1e8] sm:$0xff] }
  0x38   :  { %335 = vmatpush.msrb.mxu1 %v228_v5  ;;  %375 = vmatpush.msrb.mxu3 %v229_v7  ;;  %v197_v39 = vld [vmem:[#allocation2 + $0x2d8] sm:$0xff]  ;;  %v128_v40 = vld [vmem:[#allocation2 + $0xb0] sm:$0xff]  ;;  %v522_v4 = vld [vmem:[#allocation4 + $0x3e0] sm:$0xff] }
  0x39   :  { %316 = vmatpush.msrb.mxu0 %v160_v8  ;;  %356 = vmatpush.msrb.mxu2 %v161_v10  ;;  %v192_v41 = vld [vmem:[#allocation2 + $0x2b0] sm:$0xff]  ;;  %v129_v42 = vld [vmem:[#allocation2 + $0xb8] sm:$0xff]  ;;  %v523_v5 = vld [vmem:[#allocation4 + $0x3e8] sm:$0xff] }
  0x3a   :  { %336 = vmatpush.msrb.mxu1 %v224_v9  ;;  %376 = vmatpush.msrb.mxu3 %v225_v11  ;;  %v193_v43 = vld [vmem:[#allocation2 + $0x2b8] sm:$0xff]  ;;  %v124_v44 = vld [vmem:[#allocation2 + $0x90] sm:$0xff]  ;;  %v454_v6 = vld [vmem:[#allocation4 + $0x1c0] sm:$0xff] }
  0x3b   :  { %317 = vmatpush.msrb.mxu0 %v156_v12  ;;  %357 = vmatpush.msrb.mxu2 %v157_v14  ;;  %v188_v45 = vld [vmem:[#allocation2 + $0x290] sm:$0xff]  ;;  %v125_v46 = vld [vmem:[#allocation2 + $0x98] sm:$0xff]  ;;  %v455_v7 = vld [vmem:[#allocation4 + $0x1c8] sm:$0xff] }
  0x3c   :  { %337 = vmatpush.msrb.mxu1 %v220_v13  ;;  %377 = vmatpush.msrb.mxu3 %v221_v15  ;;  %v189_v47 = vld [vmem:[#allocation2 + $0x298] sm:$0xff]  ;;  %v120_v50 = vld [vmem:[#allocation2 + $0x70] sm:$0xff]  ;;  %v518_v8 = vld [vmem:[#allocation4 + $0x3c0] sm:$0xff] }
  0x3d   :  { %318 = vmatpush.msrb.mxu0 %v152_v16  ;;  %358 = vmatpush.msrb.mxu2 %v153_v18  ;;  %v184_v51 = vld [vmem:[#allocation2 + $0x270] sm:$0xff]  ;;  %v121_v52 = vld [vmem:[#allocation2 + $0x78] sm:$0xff]  ;;  %v519_v9 = vld [vmem:[#allocation4 + $0x3c8] sm:$0xff] }
  0x3e   :  { %338 = vmatpush.msrb.mxu1 %v216_v17  ;;  %378 = vmatpush.msrb.mxu3 %v217_v19  ;;  %v185_v53 = vld [vmem:[#allocation2 + $0x278] sm:$0xff]  ;;  %v116_v54 = vld [vmem:[#allocation2 + $0x50] sm:$0xff]  ;;  %v450_v10 = vld [vmem:[#allocation4 + $0x1a0] sm:$0xff] }
  0x3f   :  { %319 = vmatpush.msrb.mxu0 %v148_v20  ;;  %359 = vmatpush.msrb.mxu2 %v149_v22  ;;  %v180_v55 = vld [vmem:[#allocation2 + $0x250] sm:$0xff]  ;;  %v117_v56 = vld [vmem:[#allocation2 + $0x58] sm:$0xff]  ;;  %v451_v11 = vld [vmem:[#allocation4 + $0x1a8] sm:$0xff] }
  0x40   :  { %339 = vmatpush.msrb.mxu1 %v212_v21  ;;  %379 = vmatpush.msrb.mxu3 %v213_v23  ;;  %v181_v57 = vld [vmem:[#allocation2 + $0x258] sm:$0xff]  ;;  %v112_v58 = vld [vmem:[#allocation2 + $0x30] sm:$0xff]  ;;  %v514_v12 = vld [vmem:[#allocation4 + $0x3a0] sm:$0xff] }
  0x41   :  { %320 = vmatpush.msrb.mxu0 %v144_v24  ;;  %360 = vmatpush.msrb.mxu2 %v145_v26  ;;  %v176_v59 = vld [vmem:[#allocation2 + $0x230] sm:$0xff]  ;;  %v113_v60 = vld [vmem:[#allocation2 + $0x38] sm:$0xff]  ;;  %v515_v13 = vld [vmem:[#allocation4 + $0x3a8] sm:$0xff] }
  0x42   :  { %340 = vmatpush.msrb.mxu1 %v208_v25  ;;  %380 = vmatpush.msrb.mxu3 %v209_v27  ;;  %v177_v61 = vld [vmem:[#allocation2 + $0x238] sm:$0xff]  ;;  %v108_v62 = vld [vmem:[#allocation2 + $0x10] sm:$0xff]  ;;  %v446_v14 = vld [vmem:[#allocation4 + $0x180] sm:$0xff] }
  0x43   :  { %321 = vmatpush.msrb.mxu0 %v140_v28  ;;  %361 = vmatpush.msrb.mxu2 %v141_v30  ;;  %v172_v63 = vld [vmem:[#allocation2 + $0x210] sm:$0xff]  ;;  %v109_v0 = vld [vmem:[#allocation2 + $0x18] sm:$0xff]  ;;  %v447_v15 = vld [vmem:[#allocation4 + $0x188] sm:$0xff] }
  0x44   :  { %341 = vmatpush.msrb.mxu1 %v204_v29  ;;  %381 = vmatpush.msrb.mxu3 %v205_v31  ;;  %v173_v1 = vld [vmem:[#allocation2 + $0x218] sm:$0xff]  ;;  %v510_v16 = vld [vmem:[#allocation4 + $0x380] sm:$0xff]  ;;  %v511_v17 = vld [vmem:[#allocation4 + $0x388] sm:$0xff] }
  0x45   :  { %322 = vmatpush.msrb.mxu0 %v136_v32  ;;  %362 = vmatpush.msrb.mxu2 %v137_v34  ;;  %v442_v18 = vld [vmem:[#allocation4 + $0x160] sm:$0xff]  ;;  %v443_v19 = vld [vmem:[#allocation4 + $0x168] sm:$0xff] }
  0x46   :  { %342 = vmatpush.msrb.mxu1 %v200_v33  ;;  %382 = vmatpush.msrb.mxu3 %v201_v35  ;;  %v506_v20 = vld [vmem:[#allocation4 + $0x360] sm:$0xff]  ;;  %v507_v21 = vld [vmem:[#allocation4 + $0x368] sm:$0xff] }
  0x47   :  { %323 = vmatpush.msrb.mxu0 %v132_v36  ;;  %363 = vmatpush.msrb.mxu2 %v133_v38  ;;  %v438_v22 = vld [vmem:[#allocation4 + $0x140] sm:$0xff]  ;;  %v439_v23 = vld [vmem:[#allocation4 + $0x148] sm:$0xff] }
  0x48   :  { %343 = vmatpush.msrb.mxu1 %v196_v37  ;;  %383 = vmatpush.msrb.mxu3 %v197_v39  ;;  %v502_v24 = vld [vmem:[#allocation4 + $0x340] sm:$0xff]  ;;  %v503_v25 = vld [vmem:[#allocation4 + $0x348] sm:$0xff] }
  0x49   :  { %324 = vmatpush.msrb.mxu0 %v128_v40  ;;  %364 = vmatpush.msrb.mxu2 %v129_v42  ;;  %v434_v26 = vld [vmem:[#allocation4 + $0x120] sm:$0xff]  ;;  %v435_v27 = vld [vmem:[#allocation4 + $0x128] sm:$0xff] }
  0x4a   :  { %344 = vmatpush.msrb.mxu1 %v192_v41  ;;  %384 = vmatpush.msrb.mxu3 %v193_v43  ;;  %v498_v28 = vld [vmem:[#allocation4 + $0x320] sm:$0xff]  ;;  %v499_v29 = vld [vmem:[#allocation4 + $0x328] sm:$0xff] }
  0x4b   :  { %325 = vmatpush.msrb.mxu0 %v124_v44  ;;  %365 = vmatpush.msrb.mxu2 %v125_v46  ;;  %v430_v30 = vld [vmem:[#allocation4 + $0x100] sm:$0xff]  ;;  %v431_v31 = vld [vmem:[#allocation4 + $0x108] sm:$0xff] }
  0x4c   :  { %345 = vmatpush.msrb.mxu1 %v188_v45  ;;  %385 = vmatpush.msrb.mxu3 %v189_v47  ;;  %v494_v32 = vld [vmem:[#allocation4 + $0x300] sm:$0xff]  ;;  %v495_v33 = vld [vmem:[#allocation4 + $0x308] sm:$0xff] }
  0x4d   :  { %250 = vmatmul.f32.vlgmr.msra.gmra.mxu0 %v104_v48  ;;  %270 = vmatmul.f32.vlgmr.msra.gmra.mxu1 %v105_v49  ;;  %v426_v34 = vld [vmem:[#allocation4 + $0xe0] sm:$0xff]  ;;  %v427_v35 = vld [vmem:[#allocation4 + $0xe8] sm:$0xff] }
  0x4e   :  { %290 = vmatmul.f32.vlgmr.msra.gmra.mxu2 %v104_v48  ;;  %310 = vmatmul.f32.vlgmr.msra.gmra.mxu3 %v105_v49  ;;  %v490_v36 = vld [vmem:[#allocation4 + $0x2e0] sm:$0xff]  ;;  %v491_v37 = vld [vmem:[#allocation4 + $0x2e8] sm:$0xff] }
  0x4f   :  { %326 = vmatpush.msrb.mxu0 %v120_v50  ;;  %346 = vmatpush.msrb.mxu1 %v184_v51  ;;  %v422_v38 = vld [vmem:[#allocation4 + $0xc0] sm:$0xff]  ;;  %v423_v39 = vld [vmem:[#allocation4 + $0xc8] sm:$0xff] }
  0x50   :  { %366 = vmatpush.msrb.mxu2 %v121_v52  ;;  %386 = vmatpush.msrb.mxu3 %v185_v53  ;;  %v486_v40 = vld [vmem:[#allocation4 + $0x2c0] sm:$0xff]  ;;  %v487_v41 = vld [vmem:[#allocation4 + $0x2c8] sm:$0xff] }
  0x51   :  { %327 = vmatpush.msrb.mxu0 %v116_v54  ;;  %347 = vmatpush.msrb.mxu1 %v180_v55  ;;  %v418_v42 = vld [vmem:[#allocation4 + $0xa0] sm:$0xff]  ;;  %v419_v43 = vld [vmem:[#allocation4 + $0xa8] sm:$0xff] }
  0x52   :  { %367 = vmatpush.msrb.mxu2 %v117_v56  ;;  %387 = vmatpush.msrb.mxu3 %v181_v57  ;;  %v482_v44 = vld [vmem:[#allocation4 + $0x2a0] sm:$0xff]  ;;  %v483_v45 = vld [vmem:[#allocation4 + $0x2a8] sm:$0xff] }
  0x53   :  { %328 = vmatpush.msrb.mxu0 %v112_v58  ;;  %348 = vmatpush.msrb.mxu1 %v176_v59  ;;  %v414_v46 = vld [vmem:[#allocation4 + $0x80] sm:$0xff]  ;;  %v415_v47 = vld [vmem:[#allocation4 + $0x88] sm:$0xff] }
  0x54   :  { %368 = vmatpush.msrb.mxu2 %v113_v60  ;;  %388 = vmatpush.msrb.mxu3 %v177_v61  ;;  %v410_v50 = vld [vmem:[#allocation4 + $0x60] sm:$0xff]  ;;  %v411_v51 = vld [vmem:[#allocation4 + $0x68] sm:$0xff] }
  0x55   :  { %329 = vmatpush.msrb.mxu0 %v108_v62  ;;  %349 = vmatpush.msrb.mxu1 %v172_v63  ;;  %v474_v52 = vld [vmem:[#allocation4 + $0x260] sm:$0xff]  ;;  %v475_v53 = vld [vmem:[#allocation4 + $0x268] sm:$0xff] }
  0x56   :  { %369 = vmatpush.msrb.mxu2 %v109_v0  ;;  %389 = vmatpush.msrb.mxu3 %v173_v1  ;;  %v406_v54 = vld [vmem:[#allocation4 + $0x40] sm:$0xff]  ;;  %v407_v55 = vld [vmem:[#allocation4 + $0x48] sm:$0xff]  ;;  %v460_v0 = vld [vmem:[#allocation4 + $0x1f0] sm:$0xff] }
  0x57   :  { %330 = vmatmul.f32.vlgmr.msrb.gmra.mxu0 %v104_v48  ;;  %350 = vmatmul.f32.vlgmr.msrb.gmra.mxu1 %v105_v49  ;;  %v470_v56 = vld [vmem:[#allocation4 + $0x240] sm:$0xff]  ;;  %v471_v57 = vld [vmem:[#allocation4 + $0x248] sm:$0xff]  ;;  %v461_v1 = vld [vmem:[#allocation4 + $0x1f8] sm:$0xff] }
  0x58   :  { %370 = vmatmul.f32.vlgmr.msrb.gmra.mxu2 %v104_v48  ;;  %390 = vmatmul.f32.vlgmr.msrb.gmra.mxu3 %v105_v49  ;;  %v478_v48 = vld [vmem:[#allocation4 + $0x280] sm:$0xff]  ;;  %v479_v49 = vld [vmem:[#allocation4 + $0x288] sm:$0xff] }
  0x59   :  { %536 = vmatpush.msra.mxu0 %v458_v2  ;;  %576 = vmatpush.msra.mxu2 %v459_v3  ;;  %v402_v58 = vld [vmem:[#allocation4 + $0x20] sm:$0xff]  ;;  %v403_v59 = vld [vmem:[#allocation4 + $0x28] sm:$0xff] }
  0x5a   :  { %556 = vmatpush.msra.mxu1 %v522_v4  ;;  %596 = vmatpush.msra.mxu3 %v523_v5  ;;  %v466_v60 = vld [vmem:[#allocation4 + $0x220] sm:$0xff]  ;;  %v467_v61 = vld [vmem:[#allocation4 + $0x228] sm:$0xff]  ;;  %v456_v4 = vld [vmem:[#allocation4 + $0x1d0] sm:$0xff] }
  0x5b   :  { %537 = vmatpush.msra.mxu0 %v454_v6  ;;  %577 = vmatpush.msra.mxu2 %v455_v7  ;;  %v398_v62 = vld [vmem:[#allocation4] sm:$0xff]  ;;  %v399_v63 = vld [vmem:[#allocation4 + $0x8] sm:$0xff]  ;;  %v457_v5 = vld [vmem:[#allocation4 + $0x1d8] sm:$0xff] }
  0x5c   :  { %557 = vmatpush.msra.mxu1 %v518_v8  ;;  %597 = vmatpush.msra.mxu3 %v519_v9  ;;  %v462_v2 = vld [vmem:[#allocation4 + $0x200] sm:$0xff]  ;;  %v463_v3 = vld [vmem:[#allocation4 + $0x208] sm:$0xff]  ;;  %v524_v6 = vld [vmem:[#allocation4 + $0x3f0] sm:$0xff] }
  0x5d   :  { %538 = vmatpush.msra.mxu0 %v450_v10  ;;  %578 = vmatpush.msra.mxu2 %v451_v11  ;;  %v525_v7 = vld [vmem:[#allocation4 + $0x3f8] sm:$0xff]  ;;  %v452_v8 = vld [vmem:[#allocation4 + $0x1b0] sm:$0xff] }
  0x5e   :  { %558 = vmatpush.msra.mxu1 %v514_v12  ;;  %598 = vmatpush.msra.mxu3 %v515_v13  ;;  %v453_v9 = vld [vmem:[#allocation4 + $0x1b8] sm:$0xff]  ;;  %v448_v10 = vld [vmem:[#allocation4 + $0x190] sm:$0xff] }
  0x5f   :  { %539 = vmatpush.msra.mxu0 %v446_v14  ;;  %579 = vmatpush.msra.mxu2 %v447_v15  ;;  %v449_v11 = vld [vmem:[#allocation4 + $0x198] sm:$0xff]  ;;  %v444_v12 = vld [vmem:[#allocation4 + $0x170] sm:$0xff] }
  0x60   :  { %559 = vmatpush.msra.mxu1 %v510_v16  ;;  %599 = vmatpush.msra.mxu3 %v511_v17  ;;  %v520_v13 = vld [vmem:[#allocation4 + $0x3d0] sm:$0xff]  ;;  %v445_v14 = vld [vmem:[#allocation4 + $0x178] sm:$0xff] }
  0x61   :  { %540 = vmatpush.msra.mxu0 %v442_v18  ;;  %580 = vmatpush.msra.mxu2 %v443_v19  ;;  %v521_v15 = vld [vmem:[#allocation4 + $0x3d8] sm:$0xff]  ;;  %v440_v16 = vld [vmem:[#allocation4 + $0x150] sm:$0xff] }
  0x62   :  { %560 = vmatpush.msra.mxu1 %v506_v20  ;;  %600 = vmatpush.msra.mxu3 %v507_v21  ;;  %v516_v17 = vld [vmem:[#allocation4 + $0x3b0] sm:$0xff]  ;;  %v441_v18 = vld [vmem:[#allocation4 + $0x158] sm:$0xff] }
  0x63   :  { %541 = vmatpush.msra.mxu0 %v438_v22  ;;  %581 = vmatpush.msra.mxu2 %v439_v23  ;;  %v517_v19 = vld [vmem:[#allocation4 + $0x3b8] sm:$0xff]  ;;  %v436_v20 = vld [vmem:[#allocation4 + $0x130] sm:$0xff] }
  0x64   :  { %561 = vmatpush.msra.mxu1 %v502_v24  ;;  %601 = vmatpush.msra.mxu3 %v503_v25  ;;  %v512_v21 = vld [vmem:[#allocation4 + $0x390] sm:$0xff]  ;;  %v437_v22 = vld [vmem:[#allocation4 + $0x138] sm:$0xff] }
  0x65   :  { %542 = vmatpush.msra.mxu0 %v434_v26  ;;  %582 = vmatpush.msra.mxu2 %v435_v27  ;;  %v513_v23 = vld [vmem:[#allocation4 + $0x398] sm:$0xff]  ;;  %v432_v24 = vld [vmem:[#allocation4 + $0x110] sm:$0xff] }
  0x66   :  { %562 = vmatpush.msra.mxu1 %v498_v28  ;;  %602 = vmatpush.msra.mxu3 %v499_v29  ;;  %v508_v25 = vld [vmem:[#allocation4 + $0x370] sm:$0xff]  ;;  %v433_v26 = vld [vmem:[#allocation4 + $0x118] sm:$0xff] }
  0x67   :  { %543 = vmatpush.msra.mxu0 %v430_v30  ;;  %583 = vmatpush.msra.mxu2 %v431_v31  ;;  %v509_v27 = vld [vmem:[#allocation4 + $0x378] sm:$0xff]  ;;  %v428_v28 = vld [vmem:[#allocation4 + $0xf0] sm:$0xff] }
  0x68   :  { %563 = vmatpush.msra.mxu1 %v494_v32  ;;  %603 = vmatpush.msra.mxu3 %v495_v33  ;;  %v504_v29 = vld [vmem:[#allocation4 + $0x350] sm:$0xff]  ;;  %v429_v30 = vld [vmem:[#allocation4 + $0xf8] sm:$0xff] }
  0x69   :  { %544 = vmatpush.msra.mxu0 %v426_v34  ;;  %584 = vmatpush.msra.mxu2 %v427_v35  ;;  %v505_v31 = vld [vmem:[#allocation4 + $0x358] sm:$0xff]  ;;  %v424_v32 = vld [vmem:[#allocation4 + $0xd0] sm:$0xff] }
  0x6a   :  { %564 = vmatpush.msra.mxu1 %v490_v36  ;;  %604 = vmatpush.msra.mxu3 %v491_v37  ;;  %v500_v33 = vld [vmem:[#allocation4 + $0x330] sm:$0xff]  ;;  %v425_v34 = vld [vmem:[#allocation4 + $0xd8] sm:$0xff] }
  0x6b   :  { %545 = vmatpush.msra.mxu0 %v422_v38  ;;  %585 = vmatpush.msra.mxu2 %v423_v39  ;;  %v501_v35 = vld [vmem:[#allocation4 + $0x338] sm:$0xff]  ;;  %v420_v36 = vld [vmem:[#allocation4 + $0xb0] sm:$0xff] }
  0x6c   :  { %565 = vmatpush.msra.mxu1 %v486_v40  ;;  %605 = vmatpush.msra.mxu3 %v487_v41  ;;  %v496_v37 = vld [vmem:[#allocation4 + $0x310] sm:$0xff]  ;;  %v421_v38 = vld [vmem:[#allocation4 + $0xb8] sm:$0xff] }
  0x6d   :  { %546 = vmatpush.msra.mxu0 %v418_v42  ;;  %586 = vmatpush.msra.mxu2 %v419_v43  ;;  %v497_v39 = vld [vmem:[#allocation4 + $0x318] sm:$0xff]  ;;  %v416_v40 = vld [vmem:[#allocation4 + $0x90] sm:$0xff] }
  0x6e   :  { %566 = vmatpush.msra.mxu1 %v482_v44  ;;  %606 = vmatpush.msra.mxu3 %v483_v45  ;;  %v492_v41 = vld [vmem:[#allocation4 + $0x2f0] sm:$0xff]  ;;  %v417_v42 = vld [vmem:[#allocation4 + $0x98] sm:$0xff] }
  0x6f   :  { %547 = vmatpush.msra.mxu0 %v414_v46  ;;  %587 = vmatpush.msra.mxu2 %v415_v47  ;;  %v493_v43 = vld [vmem:[#allocation4 + $0x2f8] sm:$0xff]  ;;  %v412_v44 = vld [vmem:[#allocation4 + $0x70] sm:$0xff] }
  0x70   :  { %567 = vmatpush.msra.mxu1 %v478_v48  ;;  %607 = vmatpush.msra.mxu3 %v479_v49  ;;  %v488_v45 = vld [vmem:[#allocation4 + $0x2d0] sm:$0xff]  ;;  %v413_v46 = vld [vmem:[#allocation4 + $0x78] sm:$0xff] }
  0x71   :  { %548 = vmatpush.msra.mxu0 %v410_v50  ;;  %588 = vmatpush.msra.mxu2 %v411_v51  ;;  %v489_v47 = vld [vmem:[#allocation4 + $0x2d8] sm:$0xff]  ;;  %v408_v48 = vld [vmem:[#allocation4 + $0x50] sm:$0xff] }
  0x72   :  { %568 = vmatpush.msra.mxu1 %v474_v52  ;;  %608 = vmatpush.msra.mxu3 %v475_v53  ;;  %v484_v49 = vld [vmem:[#allocation4 + $0x2b0] sm:$0xff]  ;;  %v409_v50 = vld [vmem:[#allocation4 + $0x58] sm:$0xff] }
  0x73   :  { %549 = vmatpush.msra.mxu0 %v406_v54  ;;  %589 = vmatpush.msra.mxu2 %v407_v55  ;;  %v485_v51 = vld [vmem:[#allocation4 + $0x2b8] sm:$0xff]  ;;  %v404_v52 = vld [vmem:[#allocation4 + $0x30] sm:$0xff] }
  0x74   :  { %569 = vmatpush.msra.mxu1 %v470_v56  ;;  %609 = vmatpush.msra.mxu3 %v471_v57  ;;  %v480_v53 = vld [vmem:[#allocation4 + $0x290] sm:$0xff]  ;;  %v405_v54 = vld [vmem:[#allocation4 + $0x38] sm:$0xff] }
  0x75   :  { %550 = vmatpush.msra.mxu0 %v402_v58  ;;  %590 = vmatpush.msra.mxu2 %v403_v59  ;;  %v481_v55 = vld [vmem:[#allocation4 + $0x298] sm:$0xff]  ;;  %v400_v56 = vld [vmem:[#allocation4 + $0x10] sm:$0xff] }
  0x76   :  { %570 = vmatpush.msra.mxu1 %v466_v60  ;;  %610 = vmatpush.msra.mxu3 %v467_v61  ;;  %v476_v57 = vld [vmem:[#allocation4 + $0x270] sm:$0xff]  ;;  %v401_v58 = vld [vmem:[#allocation4 + $0x18] sm:$0xff] }
  0x77   :  { %551 = vmatpush.msra.mxu0 %v398_v62  ;;  %591 = vmatpush.msra.mxu2 %v399_v63  ;;  %v477_v59 = vld [vmem:[#allocation4 + $0x278] sm:$0xff]  ;;  %v472_v60 = vld [vmem:[#allocation4 + $0x250] sm:$0xff] }
  0x78   :  { %571 = vmatpush.msra.mxu1 %v462_v2  ;;  %611 = vmatpush.msra.mxu3 %v463_v3  ;;  %v473_v61 = vld [vmem:[#allocation4 + $0x258] sm:$0xff]  ;;  %v468_v62 = vld [vmem:[#allocation4 + $0x230] sm:$0xff] }
  0x79   :  { %616 = vmatpush.msrb.mxu0 %v460_v0  ;;  %656 = vmatpush.msrb.mxu2 %v461_v1  ;;  %v469_v63 = vld [vmem:[#allocation4 + $0x238] sm:$0xff]  ;;  %v464_v0 = vld [vmem:[#allocation4 + $0x210] sm:$0xff] }
  0x7a   :  { %636 = vmatpush.msrb.mxu1 %v524_v6  ;;  %676 = vmatpush.msrb.mxu3 %v525_v7  ;;  %v465_v1 = vld [vmem:[#allocation4 + $0x218] sm:$0xff] }
  0x7b   :  { %617 = vmatpush.msrb.mxu0 %v456_v4  ;;  %657 = vmatpush.msrb.mxu2 %v457_v5 }
  0x7c   :  { %637 = vmatpush.msrb.mxu1 %v520_v13  ;;  %677 = vmatpush.msrb.mxu3 %v521_v15  ;;  %v794_v13 = vld [vmem:[#allocation6 + $0x2f0] sm:$0xff] }
  0x7d   :  { %618 = vmatpush.msrb.mxu0 %v452_v8  ;;  %658 = vmatpush.msrb.mxu2 %v453_v9 }
  0x7e   :  { %638 = vmatpush.msrb.mxu1 %v516_v17  ;;  %678 = vmatpush.msrb.mxu3 %v517_v19  ;;  %v792_v17 = vld [vmem:[#allocation6 + $0x2e0] sm:$0xff] }
  0x7f   :  { %619 = vmatpush.msrb.mxu0 %v448_v10  ;;  %659 = vmatpush.msrb.mxu2 %v449_v11 }
  0x80   :  { %639 = vmatpush.msrb.mxu1 %v512_v21  ;;  %679 = vmatpush.msrb.mxu3 %v513_v23  ;;  %v790_v21 = vld [vmem:[#allocation6 + $0x2d0] sm:$0xff] }
  0x81   :  { %620 = vmatpush.msrb.mxu0 %v444_v12  ;;  %660 = vmatpush.msrb.mxu2 %v445_v14  ;;  %v730_v12 = vld [vmem:[#allocation6 + $0xf0] sm:$0xff] }
  0x82   :  { %640 = vmatpush.msrb.mxu1 %v508_v25  ;;  %680 = vmatpush.msrb.mxu3 %v509_v27  ;;  %v762_v25 = vld [vmem:[#allocation6 + $0x1f0] sm:$0xff] }
  0x83   :  { %621 = vmatpush.msrb.mxu0 %v440_v16  ;;  %661 = vmatpush.msrb.mxu2 %v441_v18  ;;  %v728_v16 = vld [vmem:[#allocation6 + $0xe0] sm:$0xff]  ;;  %v826_v27 = vld [vmem:[#allocation6 + $0x3f0] sm:$0xff] }
  0x84   :  { %641 = vmatpush.msrb.mxu1 %v504_v29  ;;  %681 = vmatpush.msrb.mxu3 %v505_v31  ;;  %v760_v29 = vld [vmem:[#allocation6 + $0x1e0] sm:$0xff] }
  0x85   :  { %622 = vmatpush.msrb.mxu0 %v436_v20  ;;  %662 = vmatpush.msrb.mxu2 %v437_v22  ;;  %v726_v20 = vld [vmem:[#allocation6 + $0xd0] sm:$0xff]  ;;  %v824_v31 = vld [vmem:[#allocation6 + $0x3e0] sm:$0xff] }
  0x86   :  { %642 = vmatpush.msrb.mxu1 %v500_v33  ;;  %682 = vmatpush.msrb.mxu3 %v501_v35  ;;  %v758_v33 = vld [vmem:[#allocation6 + $0x1d0] sm:$0xff] }
  0x87   :  { %623 = vmatpush.msrb.mxu0 %v432_v24  ;;  %663 = vmatpush.msrb.mxu2 %v433_v26  ;;  %v724_v24 = vld [vmem:[#allocation6 + $0xc0] sm:$0xff]  ;;  %v822_v35 = vld [vmem:[#allocation6 + $0x3d0] sm:$0xff] }
  0x88   :  { %643 = vmatpush.msrb.mxu1 %v496_v37  ;;  %683 = vmatpush.msrb.mxu3 %v497_v39  ;;  %v788_v26 = vld [vmem:[#allocation6 + $0x2c0] sm:$0xff] }
  0x89   :  { %624 = vmatpush.msrb.mxu0 %v428_v28  ;;  %664 = vmatpush.msrb.mxu2 %v429_v30  ;;  %v722_v28 = vld [vmem:[#allocation6 + $0xb0] sm:$0xff]  ;;  %v756_v37 = vld [vmem:[#allocation6 + $0x1c0] sm:$0xff] }
  0x8a   :  { %644 = vmatpush.msrb.mxu1 %v492_v41  ;;  %684 = vmatpush.msrb.mxu3 %v493_v43  ;;  %v786_v30 = vld [vmem:[#allocation6 + $0x2b0] sm:$0xff]  ;;  %v820_v39 = vld [vmem:[#allocation6 + $0x3c0] sm:$0xff] }
  0x8b   :  { %625 = vmatpush.msrb.mxu0 %v424_v32  ;;  %665 = vmatpush.msrb.mxu2 %v425_v34  ;;  %v720_v32 = vld [vmem:[#allocation6 + $0xa0] sm:$0xff]  ;;  %v754_v41 = vld [vmem:[#allocation6 + $0x1b0] sm:$0xff] }
  0x8c   :  { %645 = vmatpush.msrb.mxu1 %v488_v45  ;;  %685 = vmatpush.msrb.mxu3 %v489_v47  ;;  %v784_v34 = vld [vmem:[#allocation6 + $0x2a0] sm:$0xff]  ;;  %v818_v43 = vld [vmem:[#allocation6 + $0x3b0] sm:$0xff] }
  0x8d   :  { %626 = vmatpush.msrb.mxu0 %v420_v36  ;;  %666 = vmatpush.msrb.mxu2 %v421_v38  ;;  %v718_v36 = vld [vmem:[#allocation6 + $0x90] sm:$0xff]  ;;  %v752_v45 = vld [vmem:[#allocation6 + $0x1a0] sm:$0xff] }
  0x8e   :  { %646 = vmatpush.msrb.mxu1 %v484_v49  ;;  %686 = vmatpush.msrb.mxu3 %v485_v51  ;;  %v782_v38 = vld [vmem:[#allocation6 + $0x290] sm:$0xff]  ;;  %v816_v47 = vld [vmem:[#allocation6 + $0x3a0] sm:$0xff] }
  0x8f   :  { %627 = vmatpush.msrb.mxu0 %v416_v40  ;;  %667 = vmatpush.msrb.mxu2 %v417_v42  ;;  %v716_v40 = vld [vmem:[#allocation6 + $0x80] sm:$0xff]  ;;  %v750_v49 = vld [vmem:[#allocation6 + $0x190] sm:$0xff] }
  0x90   :  { %647 = vmatpush.msrb.mxu1 %v480_v53  ;;  %687 = vmatpush.msrb.mxu3 %v481_v55  ;;  %v780_v42 = vld [vmem:[#allocation6 + $0x280] sm:$0xff]  ;;  %v814_v51 = vld [vmem:[#allocation6 + $0x390] sm:$0xff] }
  0x91   :  { %628 = vmatpush.msrb.mxu0 %v412_v44  ;;  %668 = vmatpush.msrb.mxu2 %v413_v46  ;;  %v714_v44 = vld [vmem:[#allocation6 + $0x70] sm:$0xff]  ;;  %v748_v53 = vld [vmem:[#allocation6 + $0x180] sm:$0xff] }
  0x92   :  { %648 = vmatpush.msrb.mxu1 %v476_v57  ;;  %688 = vmatpush.msrb.mxu3 %v477_v59  ;;  %v778_v46 = vld [vmem:[#allocation6 + $0x270] sm:$0xff]  ;;  %v812_v55 = vld [vmem:[#allocation6 + $0x380] sm:$0xff] }
  0x93   :  { %629 = vmatpush.msrb.mxu0 %v408_v48  ;;  %669 = vmatpush.msrb.mxu2 %v409_v50  ;;  %v712_v48 = vld [vmem:[#allocation6 + $0x60] sm:$0xff]  ;;  %v746_v57 = vld [vmem:[#allocation6 + $0x170] sm:$0xff] }
  0x94   :  { %649 = vmatpush.msrb.mxu1 %v472_v60  ;;  %689 = vmatpush.msrb.mxu3 %v473_v61  ;;  %v776_v50 = vld [vmem:[#allocation6 + $0x260] sm:$0xff]  ;;  %v810_v59 = vld [vmem:[#allocation6 + $0x370] sm:$0xff] }
  0x95   :  { %630 = vmatpush.msrb.mxu0 %v404_v52  ;;  %670 = vmatpush.msrb.mxu2 %v405_v54  ;;  %v710_v52 = vld [vmem:[#allocation6 + $0x50] sm:$0xff]  ;;  %v744_v61 = vld [vmem:[#allocation6 + $0x160] sm:$0xff] }
  0x96   :  { %650 = vmatpush.msrb.mxu1 %v468_v62  ;;  %690 = vmatpush.msrb.mxu3 %v469_v63  ;;  %v774_v54 = vld [vmem:[#allocation6 + $0x250] sm:$0xff]  ;;  %v808_v63 = vld [vmem:[#allocation6 + $0x360] sm:$0xff] }
  0x97   :  { %631 = vmatpush.msrb.mxu0 %v400_v56  ;;  %671 = vmatpush.msrb.mxu2 %v401_v58  ;;  %v708_v56 = vld [vmem:[#allocation6 + $0x40] sm:$0xff]  ;;  %v706_v60 = vld [vmem:[#allocation6 + $0x30] sm:$0xff] }
  0x98   :  { %651 = vmatpush.msrb.mxu1 %v464_v0  ;;  %691 = vmatpush.msrb.mxu3 %v465_v1  ;;  %v772_v58 = vld [vmem:[#allocation6 + $0x240] sm:$0xff]  ;;  %v770_v62 = vld [vmem:[#allocation6 + $0x230] sm:$0xff] }
  0x99   :  { %v704_v0 = vld [vmem:[#allocation6 + $0x20] sm:$0xff]  ;;  %v742_v1 = vld [vmem:[#allocation6 + $0x150] sm:$0xff] }
  0xca   :  { %v251_v2 = vpop.f32.mrf.mxu0  ;;  %v271_v3 = vpop.f32.mrf.mxu1 }
  0xcb   :  { %v272_v8 = vadd.f32 %v271_v3, %v251_v2  ;;  %v768_v2 = vld [vmem:[#allocation6 + $0x220] sm:$0xff]  ;;  %v806_v3 = vld [vmem:[#allocation6 + $0x350] sm:$0xff] }
  0xd1   :  { %v291_v4 = vpop.f32.mrf.mxu2  ;;  %v311_v5 = vpop.f32.mrf.mxu3 }
  0xd2   :  { %v312_v18 = vadd.f32 %v311_v5, %v291_v4  ;;  %v702_v4 = vld [vmem:[#allocation6 + $0x10] sm:$0xff]  ;;  %v740_v5 = vld [vmem:[#allocation6 + $0x140] sm:$0xff] }
  0xd4   :  { %v331_v6 = vpop.f32.mrf.mxu0  ;;  %v351_v7 = vpop.f32.mrf.mxu1 }
  0xd5   :  { %v352_v9 = vadd.f32 %v351_v7, %v331_v6  ;;  %v766_v6 = vld [vmem:[#allocation6 + $0x210] sm:$0xff]  ;;  %v804_v7 = vld [vmem:[#allocation6 + $0x340] sm:$0xff] }
  0xd7   :  { %v394_v10 = vmax.f32 %v272_v8, %v352_v9  ;;  %v700_v8 = vld [vmem:[#allocation6] sm:$0xff]  ;;  %v738_v9 = vld [vmem:[#allocation6 + $0x130] sm:$0xff] }
  0xd9   :  { %v396_v11 = vmax.f32 %v394_v10, 0.0  ;;  %v731_v10 = vld [vmem:[#allocation6 + $0xf8] sm:$0xff] }
  0xdb   :  { %v371_v14 = vpop.f32.mrf.mxu2  ;;  %v391_v15 = vpop.f32.mrf.mxu3  ;;  %552 = vmatmul.f32.vlgmr.msra.gmra.mxu0 %v396_v11  ;;  %592 = vmatmul.f32.vlgmr.msra.gmra.mxu2 %v396_v11 }
  0xdc   :  { %v392_v19 = vadd.f32 %v391_v15, %v371_v14  ;;  %834 = vmatpush.msra.mxu0 %v730_v12  ;;  %874 = vmatpush.msra.mxu2 %v794_v13  ;;  %v736_v12 = vld [vmem:[#allocation6 + $0x120] sm:$0xff]  ;;  %v802_v13 = vld [vmem:[#allocation6 + $0x330] sm:$0xff]  ;;  %v729_v14 = vld [vmem:[#allocation6 + $0xe8] sm:$0xff] }
  0xdd   :  { %v795_v15 = vld [vmem:[#allocation6 + $0x2f8] sm:$0xff] }
  0xde   :  { %v395_v22 = vmax.f32 %v312_v18, %v392_v19  ;;  %835 = vmatpush.msra.mxu0 %v728_v16  ;;  %875 = vmatpush.msra.mxu2 %v792_v17  ;;  %v734_v16 = vld [vmem:[#allocation6 + $0x110] sm:$0xff]  ;;  %v800_v17 = vld [vmem:[#allocation6 + $0x320] sm:$0xff]  ;;  %v727_v18 = vld [vmem:[#allocation6 + $0xd8] sm:$0xff] }
  0xdf   :  { %v793_v19 = vld [vmem:[#allocation6 + $0x2e8] sm:$0xff] }
  0xe0   :  { %v397_v23 = vmax.f32 %v395_v22, 0.0  ;;  %836 = vmatpush.msra.mxu0 %v726_v20  ;;  %876 = vmatpush.msra.mxu2 %v790_v21  ;;  %v732_v20 = vld [vmem:[#allocation6 + $0x100] sm:$0xff]  ;;  %v798_v21 = vld [vmem:[#allocation6 + $0x310] sm:$0xff]  ;;  %v725_v22 = vld [vmem:[#allocation6 + $0xc8] sm:$0xff] }
  0xe2   :  { %572 = vmatmul.f32.vlgmr.msra.gmra.mxu1 %v397_v23  ;;  %612 = vmatmul.f32.vlgmr.msra.gmra.mxu3 %v397_v23 }
  0xe3   :  { %632 = vmatmul.f32.vlgmr.msrb.gmra.mxu0 %v396_v11  ;;  %672 = vmatmul.f32.vlgmr.msrb.gmra.mxu2 %v396_v11  ;;  %v764_v11 = vld [vmem:[#allocation6 + $0x200] sm:$0xff] }
  0xe4   :  { %837 = vmatpush.msra.mxu0 %v724_v24  ;;  %854 = vmatpush.msra.mxu1 %v762_v25  ;;  %v723_v24 = vld [vmem:[#allocation6 + $0xb8] sm:$0xff]  ;;  %v761_v25 = vld [vmem:[#allocation6 + $0x1e8] sm:$0xff] }
  0xe5   :  { %877 = vmatpush.msra.mxu2 %v788_v26  ;;  %894 = vmatpush.msra.mxu3 %v826_v27  ;;  %v721_v26 = vld [vmem:[#allocation6 + $0xa8] sm:$0xff]  ;;  %v759_v27 = vld [vmem:[#allocation6 + $0x1d8] sm:$0xff] }
  0xe6   :  { %838 = vmatpush.msra.mxu0 %v722_v28  ;;  %855 = vmatpush.msra.mxu1 %v760_v29  ;;  %v719_v28 = vld [vmem:[#allocation6 + $0x98] sm:$0xff]  ;;  %v757_v29 = vld [vmem:[#allocation6 + $0x1c8] sm:$0xff] }
  0xe7   :  { %878 = vmatpush.msra.mxu2 %v786_v30  ;;  %895 = vmatpush.msra.mxu3 %v824_v31  ;;  %v791_v30 = vld [vmem:[#allocation6 + $0x2d8] sm:$0xff]  ;;  %v796_v31 = vld [vmem:[#allocation6 + $0x300] sm:$0xff] }
  0xe8   :  { %839 = vmatpush.msra.mxu0 %v720_v32  ;;  %856 = vmatpush.msra.mxu1 %v758_v33  ;;  %v717_v32 = vld [vmem:[#allocation6 + $0x88] sm:$0xff]  ;;  %v755_v33 = vld [vmem:[#allocation6 + $0x1b8] sm:$0xff] }
  0xe9   :  { %879 = vmatpush.msra.mxu2 %v784_v34  ;;  %896 = vmatpush.msra.mxu3 %v822_v35  ;;  %v789_v34 = vld [vmem:[#allocation6 + $0x2c8] sm:$0xff]  ;;  %v827_v35 = vld [vmem:[#allocation6 + $0x3f8] sm:$0xff] }
  0xea   :  { %652 = vmatmul.f32.vlgmr.msrb.gmra.mxu1 %v397_v23  ;;  %692 = vmatmul.f32.vlgmr.msrb.gmra.mxu3 %v397_v23  ;;  %v763_v23 = vld [vmem:[#allocation6 + $0x1f8] sm:$0xff] }
  0xeb   :  { %840 = vmatpush.msra.mxu0 %v718_v36  ;;  %857 = vmatpush.msra.mxu1 %v756_v37  ;;  %v715_v36 = vld [vmem:[#allocation6 + $0x78] sm:$0xff]  ;;  %v753_v37 = vld [vmem:[#allocation6 + $0x1a8] sm:$0xff] }
  0xec   :  { %880 = vmatpush.msra.mxu2 %v782_v38  ;;  %897 = vmatpush.msra.mxu3 %v820_v39  ;;  %v787_v38 = vld [vmem:[#allocation6 + $0x2b8] sm:$0xff]  ;;  %v825_v39 = vld [vmem:[#allocation6 + $0x3e8] sm:$0xff] }
  0xed   :  { %841 = vmatpush.msra.mxu0 %v716_v40  ;;  %858 = vmatpush.msra.mxu1 %v754_v41  ;;  %v713_v40 = vld [vmem:[#allocation6 + $0x68] sm:$0xff]  ;;  %v751_v41 = vld [vmem:[#allocation6 + $0x198] sm:$0xff] }
  0xee   :  { %881 = vmatpush.msra.mxu2 %v780_v42  ;;  %898 = vmatpush.msra.mxu3 %v818_v43  ;;  %v785_v42 = vld [vmem:[#allocation6 + $0x2a8] sm:$0xff]  ;;  %v823_v43 = vld [vmem:[#allocation6 + $0x3d8] sm:$0xff] }
  0xef   :  { %842 = vmatpush.msra.mxu0 %v714_v44  ;;  %859 = vmatpush.msra.mxu1 %v752_v45  ;;  %v711_v44 = vld [vmem:[#allocation6 + $0x58] sm:$0xff]  ;;  %v749_v45 = vld [vmem:[#allocation6 + $0x188] sm:$0xff] }
  0xf0   :  { %882 = vmatpush.msra.mxu2 %v778_v46  ;;  %899 = vmatpush.msra.mxu3 %v816_v47  ;;  %v783_v46 = vld [vmem:[#allocation6 + $0x298] sm:$0xff]  ;;  %v821_v47 = vld [vmem:[#allocation6 + $0x3c8] sm:$0xff] }
  0xf1   :  { %843 = vmatpush.msra.mxu0 %v712_v48  ;;  %860 = vmatpush.msra.mxu1 %v750_v49  ;;  %v709_v48 = vld [vmem:[#allocation6 + $0x48] sm:$0xff]  ;;  %v747_v49 = vld [vmem:[#allocation6 + $0x178] sm:$0xff] }
  0xf2   :  { %883 = vmatpush.msra.mxu2 %v776_v50  ;;  %900 = vmatpush.msra.mxu3 %v814_v51  ;;  %v781_v50 = vld [vmem:[#allocation6 + $0x288] sm:$0xff]  ;;  %v819_v51 = vld [vmem:[#allocation6 + $0x3b8] sm:$0xff] }
  0xf3   :  { %844 = vmatpush.msra.mxu0 %v710_v52  ;;  %861 = vmatpush.msra.mxu1 %v748_v53  ;;  %v707_v52 = vld [vmem:[#allocation6 + $0x38] sm:$0xff]  ;;  %v745_v53 = vld [vmem:[#allocation6 + $0x168] sm:$0xff] }
  0xf4   :  { %884 = vmatpush.msra.mxu2 %v774_v54  ;;  %901 = vmatpush.msra.mxu3 %v812_v55  ;;  %v779_v54 = vld [vmem:[#allocation6 + $0x278] sm:$0xff]  ;;  %v817_v55 = vld [vmem:[#allocation6 + $0x3a8] sm:$0xff] }
  0xf5   :  { %845 = vmatpush.msra.mxu0 %v708_v56  ;;  %862 = vmatpush.msra.mxu1 %v746_v57  ;;  %v705_v56 = vld [vmem:[#allocation6 + $0x28] sm:$0xff]  ;;  %v743_v57 = vld [vmem:[#allocation6 + $0x158] sm:$0xff] }
  0xf6   :  { %885 = vmatpush.msra.mxu2 %v772_v58  ;;  %902 = vmatpush.msra.mxu3 %v810_v59  ;;  %v777_v58 = vld [vmem:[#allocation6 + $0x268] sm:$0xff]  ;;  %v815_v59 = vld [vmem:[#allocation6 + $0x398] sm:$0xff] }
  0xf7   :  { %846 = vmatpush.msra.mxu0 %v706_v60  ;;  %863 = vmatpush.msra.mxu1 %v744_v61  ;;  %v703_v60 = vld [vmem:[#allocation6 + $0x18] sm:$0xff]  ;;  %v741_v61 = vld [vmem:[#allocation6 + $0x148] sm:$0xff] }
  0xf8   :  { %886 = vmatpush.msra.mxu2 %v770_v62  ;;  %903 = vmatpush.msra.mxu3 %v808_v63  ;;  %v775_v62 = vld [vmem:[#allocation6 + $0x258] sm:$0xff]  ;;  %v813_v63 = vld [vmem:[#allocation6 + $0x388] sm:$0xff] }
  0xf9   :  { %847 = vmatpush.msra.mxu0 %v704_v0  ;;  %864 = vmatpush.msra.mxu1 %v742_v1  ;;  %v701_v0 = vld [vmem:[#allocation6 + $0x8] sm:$0xff]  ;;  %v739_v1 = vld [vmem:[#allocation6 + $0x138] sm:$0xff] }
  0xfa   :  { %887 = vmatpush.msra.mxu2 %v768_v2  ;;  %904 = vmatpush.msra.mxu3 %v806_v3  ;;  %v773_v2 = vld [vmem:[#allocation6 + $0x248] sm:$0xff]  ;;  %v811_v3 = vld [vmem:[#allocation6 + $0x378] sm:$0xff] }
  0xfb   :  { %848 = vmatpush.msra.mxu0 %v702_v4  ;;  %865 = vmatpush.msra.mxu1 %v740_v5  ;;  %v737_v4 = vld [vmem:[#allocation6 + $0x128] sm:$0xff]  ;;  %v771_v5 = vld [vmem:[#allocation6 + $0x238] sm:$0xff] }
  0xfc   :  { %888 = vmatpush.msra.mxu2 %v766_v6  ;;  %905 = vmatpush.msra.mxu3 %v804_v7  ;;  %v809_v6 = vld [vmem:[#allocation6 + $0x368] sm:$0xff]  ;;  %v735_v7 = vld [vmem:[#allocation6 + $0x118] sm:$0xff] }
  0xfd   :  { %849 = vmatpush.msra.mxu0 %v700_v8  ;;  %866 = vmatpush.msra.mxu1 %v738_v9  ;;  %v769_v8 = vld [vmem:[#allocation6 + $0x228] sm:$0xff]  ;;  %v807_v9 = vld [vmem:[#allocation6 + $0x358] sm:$0xff] }
  0xfe   :  { %889 = vmatpush.msra.mxu2 %v764_v11  ;;  %906 = vmatpush.msra.mxu3 %v802_v13  ;;  %v767_v11 = vld [vmem:[#allocation6 + $0x218] sm:$0xff]  ;;  %v765_v13 = vld [vmem:[#allocation6 + $0x208] sm:$0xff] }
  0xff   :  { %914 = vmatpush.msrb.mxu0 %v731_v10  ;;  %867 = vmatpush.msra.mxu1 %v736_v12  ;;  %v733_v10 = vld [vmem:[#allocation6 + $0x108] sm:$0xff] }
 0x100   :  { %954 = vmatpush.msrb.mxu2 %v795_v15  ;;  %907 = vmatpush.msra.mxu3 %v800_v17  ;;  %v805_v12 = vld [vmem:[#allocation6 + $0x348] sm:$0xff]  ;;  %v526_v17 = vld [vmem:[%s1446_s3] sm:$0xf] }
 0x101   :  { %915 = vmatpush.msrb.mxu0 %v729_v14  ;;  %868 = vmatpush.msra.mxu1 %v734_v16  ;;  %v803_v14 = vld [vmem:[#allocation6 + $0x338] sm:$0xff]  ;;  %v801_v15 = vld [vmem:[#allocation6 + $0x328] sm:$0xff] }
 0x102   :  { %955 = vmatpush.msrb.mxu2 %v793_v19  ;;  %908 = vmatpush.msra.mxu3 %v798_v21  ;;  %v799_v16 = vld [vmem:[#allocation6 + $0x318] sm:$0xff] }
 0x103   :  { %916 = vmatpush.msrb.mxu0 %v727_v18  ;;  %869 = vmatpush.msra.mxu1 %v732_v20  ;;  %v797_v18 = vld [vmem:[#allocation6 + $0x308] sm:$0xff]  ;;  %v528_v20 = vperm.slane %v526_v17, 0 }
 0x104   :  { %956 = vmatpush.msrb.mxu2 %v791_v30  ;;  %909 = vmatpush.msra.mxu3 %v796_v31  ;;  %v1010_v31 = vld [vmem:[#allocation7 + $0x70] sm:$0xff] }
 0x105   :  { %917 = vmatpush.msrb.mxu0 %v725_v22  ;;  %934 = vmatpush.msrb.mxu1 %v763_v23 }
 0x106   :  { %957 = vmatpush.msrb.mxu2 %v789_v34  ;;  %974 = vmatpush.msrb.mxu3 %v827_v35  ;;  %v1009_v35 = vld [vmem:[#allocation7 + $0x68] sm:$0xff] }
 0x107   :  { %918 = vmatpush.msrb.mxu0 %v723_v24  ;;  %935 = vmatpush.msrb.mxu1 %v761_v25  ;;  %v529_v25 = vperm.slane %v526_v17, 1 }
 0x108   :  { %958 = vmatpush.msrb.mxu2 %v787_v38  ;;  %975 = vmatpush.msrb.mxu3 %v825_v39  ;;  %v531_v39 = vperm.slane %v526_v17, 3 }
 0x109   :  { %919 = vmatpush.msrb.mxu0 %v721_v26  ;;  %936 = vmatpush.msrb.mxu1 %v759_v27  ;;  %v530_v27 = vperm.slane %v526_v17, 2  ;;  %v1083_v17 = vld [vmem:[%s1451_s8 + $0x50] sm:$0xff] }
 0x10a   :  { %959 = vmatpush.msrb.mxu2 %v785_v42  ;;  %976 = vmatpush.msrb.mxu3 %v823_v43 }
 0x10b   :  { %920 = vmatpush.msrb.mxu0 %v719_v28  ;;  %937 = vmatpush.msrb.mxu1 %v757_v29  ;;  %v1011_v28 = vld [vmem:[#allocation7 + $0x78] sm:$0xff] }
 0x10c   :  { %960 = vmatpush.msrb.mxu2 %v783_v46  ;;  %977 = vmatpush.msrb.mxu3 %v821_v47  ;;  %v1008_v46 = vld [vmem:[#allocation7 + $0x60] sm:$0xff]  ;;  %v1007_v47 = vld [vmem:[#allocation7 + $0x58] sm:$0xff] }
 0x10d   :  { %921 = vmatpush.msrb.mxu0 %v717_v32  ;;  %938 = vmatpush.msrb.mxu1 %v755_v33 }
 0x10e   :  { %961 = vmatpush.msrb.mxu2 %v781_v50  ;;  %978 = vmatpush.msrb.mxu3 %v819_v51  ;;  %v1026_v50 = vld [vmem:[#allocation7 + $0xf0] sm:$0xff]  ;;  %v1005_v51 = vld [vmem:[#allocation7 + $0x48] sm:$0xff] }
 0x10f   :  { %922 = vmatpush.msrb.mxu0 %v715_v36  ;;  %939 = vmatpush.msrb.mxu1 %v753_v37 }
 0x110   :  { %962 = vmatpush.msrb.mxu2 %v779_v54  ;;  %979 = vmatpush.msrb.mxu3 %v817_v55  ;;  %v1024_v54 = vld [vmem:[#allocation7 + $0xe0] sm:$0xff]  ;;  %v1003_v55 = vld [vmem:[#allocation7 + $0x38] sm:$0xff] }
 0x111   :  { %923 = vmatpush.msrb.mxu0 %v713_v40  ;;  %940 = vmatpush.msrb.mxu1 %v751_v41 }
 0x112   :  { %963 = vmatpush.msrb.mxu2 %v777_v58  ;;  %980 = vmatpush.msrb.mxu3 %v815_v59  ;;  %v1022_v58 = vld [vmem:[#allocation7 + $0xd0] sm:$0xff]  ;;  %v1001_v59 = vld [vmem:[#allocation7 + $0x28] sm:$0xff] }
 0x113   :  { %924 = vmatpush.msrb.mxu0 %v711_v44  ;;  %941 = vmatpush.msrb.mxu1 %v749_v45 }
 0x114   :  { %964 = vmatpush.msrb.mxu2 %v775_v62  ;;  %981 = vmatpush.msrb.mxu3 %v813_v63  ;;  %v1020_v62 = vld [vmem:[#allocation7 + $0xc0] sm:$0xff]  ;;  %v999_v63 = vld [vmem:[#allocation7 + $0x18] sm:$0xff] }
 0x115   :  { %925 = vmatpush.msrb.mxu0 %v709_v48  ;;  %942 = vmatpush.msrb.mxu1 %v747_v49  ;;  %v1027_v48 = vld [vmem:[#allocation7 + $0xf8] sm:$0xff]  ;;  %v1006_v49 = vld [vmem:[#allocation7 + $0x50] sm:$0xff] }
 0x116   :  { %965 = vmatpush.msrb.mxu2 %v773_v2  ;;  %982 = vmatpush.msrb.mxu3 %v811_v3  ;;  %v1018_v2 = vld [vmem:[#allocation7 + $0xb0] sm:$0xff]  ;;  %v997_v3 = vld [vmem:[#allocation7 + $0x8] sm:$0xff] }
 0x117   :  { %926 = vmatpush.msrb.mxu0 %v707_v52  ;;  %943 = vmatpush.msrb.mxu1 %v745_v53  ;;  %v1025_v52 = vld [vmem:[#allocation7 + $0xe8] sm:$0xff]  ;;  %v1004_v53 = vld [vmem:[#allocation7 + $0x40] sm:$0xff] }
 0x118   :  { %966 = vmatpush.msrb.mxu2 %v771_v5  ;;  %983 = vmatpush.msrb.mxu3 %v809_v6  ;;  %v996_v5 = vld [vmem:[#allocation7] sm:$0xff] }
 0x119   :  { %927 = vmatpush.msrb.mxu0 %v705_v56  ;;  %944 = vmatpush.msrb.mxu1 %v743_v57  ;;  %v1023_v56 = vld [vmem:[#allocation7 + $0xd8] sm:$0xff]  ;;  %v1002_v57 = vld [vmem:[#allocation7 + $0x30] sm:$0xff]  ;;  %v1016_v6 = vld [vmem:[#allocation7 + $0xa0] sm:$0xff] }
 0x11a   :  { %967 = vmatpush.msrb.mxu2 %v769_v8  ;;  %984 = vmatpush.msrb.mxu3 %v807_v9  ;;  %v1014_v8 = vld [vmem:[#allocation7 + $0x90] sm:$0xff]  ;;  %v1013_v9 = vld [vmem:[#allocation7 + $0x88] sm:$0xff] }
 0x11b   :  { %928 = vmatpush.msrb.mxu0 %v703_v60  ;;  %945 = vmatpush.msrb.mxu1 %v741_v61  ;;  %v1021_v60 = vld [vmem:[#allocation7 + $0xc8] sm:$0xff]  ;;  %v1000_v61 = vld [vmem:[#allocation7 + $0x20] sm:$0xff] }
 0x11c   :  { %968 = vmatpush.msrb.mxu2 %v767_v11  ;;  %985 = vmatpush.msrb.mxu3 %v805_v12  ;;  %v1088_v11 = vld [vmem:[%s1451_s8 + $0x78] sm:$0xff]  ;;  %v1087_v12 = vld [vmem:[%s1451_s8 + $0x70] sm:$0xff] }
 0x11d   :  { %929 = vmatpush.msrb.mxu0 %v701_v0  ;;  %946 = vmatpush.msrb.mxu1 %v739_v1  ;;  %v1019_v0 = vld [vmem:[#allocation7 + $0xb8] sm:$0xff]  ;;  %v998_v1 = vld [vmem:[#allocation7 + $0x10] sm:$0xff] }
 0x11e   :  { %969 = vmatpush.msrb.mxu2 %v765_v13  ;;  %986 = vmatpush.msrb.mxu3 %v803_v14  ;;  %v1086_v13 = vld [vmem:[%s1451_s8 + $0x68] sm:$0xff]  ;;  %v1085_v14 = vld [vmem:[%s1451_s8 + $0x60] sm:$0xff] }
 0x11f   :  { %947 = vmatpush.msrb.mxu1 %v737_v4  ;;  %v1017_v4 = vld [vmem:[#allocation7 + $0xa8] sm:$0xff] }
 0x120   :  { %987 = vmatpush.msrb.mxu3 %v801_v15  ;;  %v1084_v15 = vld [vmem:[%s1451_s8 + $0x58] sm:$0xff] }
 0x121   :  { %948 = vmatpush.msrb.mxu1 %v735_v7  ;;  %v1015_v7 = vld [vmem:[#allocation7 + $0x98] sm:$0xff] }
 0x122   :  { %988 = vmatpush.msrb.mxu3 %v799_v16  ;;  %v828_v16 = vld [vmem:[%s1448_s5] sm:$0x3] }
 0x123   :  { %949 = vmatpush.msrb.mxu1 %v733_v10  ;;  %v1012_v10 = vld [vmem:[#allocation7 + $0x80] sm:$0xff] }
 0x124   :  { %989 = vmatpush.msrb.mxu3 %v797_v18 }
 0x158   :  { %v553_v19 = vpop.f32.mrf.mxu0 }
 0x159   :  { %v554_v21 = vadd.f32 %v553_v19, %v528_v20  ;;  %v830_v19 = vperm.slane %v828_v16, 0  ;;  %v1082_v20 = vld [vmem:[%s1451_s8 + $0x48] sm:$0xff] }
 0x15e   :  { %v593_v23 = vpop.f32.mrf.mxu2 }
 0x15f   :  { %v573_v22 = vpop.f32.mrf.mxu1  ;;  %v594_v30 = vadd.f32 %v593_v23, %v529_v25  ;;  %v1080_v25 = vld [vmem:[%s1451_s8 + $0x38] sm:$0xff] }
 0x160   :  { %v574_v24 = vadd.f32 %v573_v22, %v554_v21  ;;  %v633_v29 = vpop.f32.mrf.mxu0  ;;  %v1081_v22 = vld [vmem:[%s1451_s8 + $0x40] sm:$0xff] }
 0x161   :  { %v634_v33 = vadd.f32 %v633_v29, %v530_v27  ;;  %v831_v27 = vperm.slane %v828_v16, 1 }
 0x162   :  { %v696_v26 = vmax.f32 %v574_v24, 0.0 }
 0x164   :  { %850 = vmatmul.f32.vlgmr.msra.gmra.mxu0 %v696_v26 }
 0x165   :  { %v613_v32 = vpop.f32.mrf.mxu3  ;;  %1032 = vmatpush.msra.mxu0 %v1011_v28 }
 0x166   :  { %v614_v34 = vadd.f32 %v613_v32, %v594_v30  ;;  %v673_v40 = vpop.f32.mrf.mxu2 }
 0x167   :  { %v653_v36 = vpop.f32.mrf.mxu1  ;;  %1033 = vmatpush.msra.mxu0 %v1010_v31  ;;  %v674_v42 = vadd.f32 %v673_v40, %v531_v39 }
 0x168   :  { %v697_v37 = vmax.f32 %v614_v34, 0.0  ;;  %v654_v38 = vadd.f32 %v653_v36, %v634_v33 }
 0x169   :  { %1034 = vmatpush.msra.mxu0 %v1009_v35 }
 0x16a   :  { %v698_v41 = vmax.f32 %v654_v38, 0.0  ;;  %870 = vmatmul.f32.vlgmr.msra.gmra.mxu1 %v697_v37 }
 0x16b   :  { %1035 = vmatpush.msra.mxu0 %v1008_v46  ;;  %1052 = vmatpush.msra.mxu1 %v1027_v48  ;;  %v1074_v46 = vld [vmem:[%s1451_s8 + $0x8] sm:$0xff]  ;;  %v1117_v48 = vld [vmem:[%s1453_s10 + $0x18] sm:$0xff] }
 0x16c   :  { %890 = vmatmul.f32.vlgmr.msra.gmra.mxu2 %v698_v41  ;;  %930 = vmatmul.f32.vlgmr.msrb.gmra.mxu0 %v696_v26 }
 0x16d   :  { %v693_v43 = vpop.f32.mrf.mxu3  ;;  %1036 = vmatpush.msra.mxu0 %v1007_v47  ;;  %1053 = vmatpush.msra.mxu1 %v1026_v50  ;;  %v1073_v47 = vld [vmem:[%s1451_s8] sm:$0xff] }
 0x16e   :  { %v694_v44 = vadd.f32 %v693_v43, %v674_v42  ;;  %1093 = vmatpush.msra.mxu2 %v1088_v11  ;;  %v1078_v42 = vld [vmem:[%s1451_s8 + $0x28] sm:$0xff]  ;;  %v1077_v43 = vld [vmem:[%s1451_s8 + $0x20] sm:$0xff] }
 0x16f   :  { %1037 = vmatpush.msra.mxu0 %v1006_v49  ;;  %1054 = vmatpush.msra.mxu1 %v1025_v52  ;;  %v1116_v49 = vld [vmem:[%s1453_s10 + $0x10] sm:$0xff]  ;;  %v1167_v50 = vld [vmem:[%s1450_s7] ss:$0 sm:$0xff] }
 0x170   :  { %v699_v45 = vmax.f32 %v694_v44, 0.0  ;;  %1094 = vmatpush.msra.mxu2 %v1087_v12  ;;  %v1076_v44 = vld [vmem:[%s1451_s8 + $0x18] sm:$0xff] }
 0x171   :  { %1038 = vmatpush.msra.mxu0 %v1005_v51  ;;  %1055 = vmatpush.msra.mxu1 %v1024_v54 }
 0x172   :  { %910 = vmatmul.f32.vlgmr.msra.gmra.mxu3 %v699_v45  ;;  %950 = vmatmul.f32.vlgmr.msrb.gmra.mxu1 %v697_v37 }
 0x173   :  { %1039 = vmatpush.msra.mxu0 %v1004_v53  ;;  %1056 = vmatpush.msra.mxu1 %v1023_v56  ;;  %v1115_v56 = vld [vmem:[%s1453_s10 + $0x8] sm:$0xff] }
 0x174   :  { %970 = vmatmul.f32.vlgmr.msrb.gmra.mxu2 %v698_v41  ;;  %v1079_v41 = vld [vmem:[%s1451_s8 + $0x30] sm:$0xff]  ;;  %1138 = vmatpush.msra.mxu3 %v1117_v48 }
 0x175   :  { %1040 = vmatpush.msra.mxu0 %v1003_v55  ;;  %1057 = vmatpush.msra.mxu1 %v1022_v58  ;;  %v1168_v58 = vld [vmem:[%s1452_s9] ss:$0 sm:$0xff] }
 0x176   :  { %1095 = vmatpush.msra.mxu2 %v1086_v13  ;;  %1139 = vmatpush.msra.mxu3 %v1116_v49 }
 0x177   :  { %1041 = vmatpush.msra.mxu0 %v1002_v57  ;;  %1058 = vmatpush.msra.mxu1 %v1021_v60  ;;  %v1114_v57 = vld [vmem:[%s1453_s10] sm:$0xff] }
 0x178   :  { %1096 = vmatpush.msra.mxu2 %v1085_v14  ;;  %1140 = vmatpush.msra.mxu3 %v1115_v56 }
 0x179   :  { %1042 = vmatpush.msra.mxu0 %v1001_v59  ;;  %1059 = vmatpush.msra.mxu1 %v1020_v62  ;;  %v1169_v62 = vld [vmem:[%s1454_s11] ss:$0 sm:$0xff] }
 0x17a   :  { %990 = vmatmul.f32.vlgmr.msrb.gmra.mxu3 %v699_v45  ;;  %1097 = vmatpush.msra.mxu2 %v1084_v15  ;;  %v1075_v45 = vld [vmem:[%s1451_s8 + $0x10] sm:$0xff] }
 0x17b   :  { %1043 = vmatpush.msra.mxu0 %v1000_v61  ;;  %1060 = vmatpush.msra.mxu1 %v1019_v0 }
 0x17c   :  { %1098 = vmatpush.msra.mxu2 %v1083_v17  ;;  %1141 = vmatpush.msra.mxu3 %v1114_v57 }
 0x17d   :  { %1044 = vmatpush.msra.mxu0 %v999_v63  ;;  %1061 = vmatpush.msra.mxu1 %v1018_v2 }
 0x17e   :  { %1099 = vmatpush.msra.mxu2 %v1082_v20 }
 0x17f   :  { %1045 = vmatpush.msra.mxu0 %v998_v1  ;;  %1062 = vmatpush.msra.mxu1 %v1017_v4 }
 0x180   :  { %1100 = vmatpush.msra.mxu2 %v1081_v22 }
 0x181   :  { %1046 = vmatpush.msra.mxu0 %v997_v3  ;;  %1063 = vmatpush.msra.mxu1 %v1016_v6 }
 0x182   :  { %1101 = vmatpush.msra.mxu2 %v1080_v25 }
 0x183   :  { %1047 = vmatpush.msra.mxu0 %v996_v5  ;;  %1064 = vmatpush.msra.mxu1 %v1015_v7 }
 0x184   :  { %1102 = vmatpush.msra.mxu2 %v1079_v41 }
 0x185   :  { %1065 = vmatpush.msra.mxu1 %v1014_v8 }
 0x186   :  { %1103 = vmatpush.msra.mxu2 %v1078_v42 }
 0x187   :  { %1066 = vmatpush.msra.mxu1 %v1013_v9 }
 0x188   :  { %1104 = vmatpush.msra.mxu2 %v1077_v43 }
 0x189   :  { %1067 = vmatpush.msra.mxu1 %v1012_v10 }
 0x18a   :  { %1105 = vmatpush.msra.mxu2 %v1076_v44 }
 0x18c   :  { %1106 = vmatpush.msra.mxu2 %v1075_v45 }
 0x18e   :  { %1107 = vmatpush.msra.mxu2 %v1074_v46 }
 0x190   :  { %1108 = vmatpush.msra.mxu2 %v1073_v47 }
 0x1e1   :  { %v851_v18 = vpop.f32.mrf.mxu0 }
 0x1e2   :  { %v852_v24 = vadd.f32 %v851_v18, %v830_v19 }
 0x1e7   :  { %v871_v21 = vpop.f32.mrf.mxu1 }
 0x1e8   :  { %v872_v26 = vadd.f32 %v871_v21, %v852_v24 }
 0x1e9   :  { %v931_v29 = vpop.f32.mrf.mxu0 }
 0x1ea   :  { %v932_v33 = vadd.f32 %v931_v29, %v831_v27 }
 0x1ef   :  { %v891_v23 = vpop.f32.mrf.mxu2  ;;  %v951_v32 = vpop.f32.mrf.mxu1 }
 0x1f0   :  { %v892_v28 = vadd.f32 %v891_v23, %v872_v26  ;;  %v952_v36 = vadd.f32 %v951_v32, %v932_v33 }
 0x1f5   :  { %v911_v30 = vpop.f32.mrf.mxu3 }
 0x1f6   :  { %v912_v31 = vadd.f32 %v911_v30, %v892_v28 }
 0x1f7   :  { %v971_v35 = vpop.f32.mrf.mxu2 }
 0x1f8   :  { %v994_v34 = vmax.f32 %v912_v31, 0.0  ;;  %v972_v37 = vadd.f32 %v971_v35, %v952_v36 }
 0x1fa   :  { %1048 = vmatmul.f32.vlgmr.msra.gmra.mxu0 %v994_v34 }
 0x1fd   :  { %v991_v38 = vpop.f32.mrf.mxu3 }
 0x1fe   :  { %v992_v39 = vadd.f32 %v991_v38, %v972_v37 }
 0x200   :  { %v995_v40 = vmax.f32 %v992_v39, 0.0 }
 0x202   :  { %1068 = vmatmul.f32.vlgmr.msra.gmra.mxu1 %v995_v40 }
 0x277   :  { %v1049_v51 = vpop.f32.mrf.mxu0 }
 0x278   :  { %v1050_v52 = vadd.f32 %v1167_v50, %v1049_v51 }
 0x27f   :  { %v1069_v53 = vpop.f32.mrf.mxu1 }
 0x280   :  { %v1070_v54 = vadd.f32 %v1069_v53, %v1050_v52 }
 0x282   :  { %v1072_v55 = vmax.f32 %v1070_v54, 0.0 }
 0x284   :  { %1109 = vmatmul.f32.vlgmr.msra.gmra.mxu2 %v1072_v55 }
 0x307   :  { %v1110_v59 = vpop.f32.mrf.mxu2 }
 0x308   :  { %v1111_v60 = vadd.f32 %v1168_v58, %v1110_v59 }
 0x30a   :  { %v1113_v61 = vmax.f32 %v1111_v60, 0.0 }
 0x30c   :  { %1156 = vmatmul.msk.f32.vlgmr.msra.gmra.mxu3 %vm1122_vm0, %v1113_v61 }
 0x38f   :  { %v1143_v63 = vpop.f32.mrf.mxu3 }
 0x390   :  { %v1144_v0 = vadd.f32 %v1169_v62, %v1143_v63 }
 0x392   :  { %v1146_v1 = vmax.f32 %v1144_v0, 0.0 }
 0x394   :  { %1148 = vst.msk [vmem:[%s1455_s12] sm:$0xff] %vm1147_vm1, %v1146_v1 }
 0x395   :  { %1153 = vsyncpa [#allocation3], 1 }
 0x396   :  { %1154 = vsyncpa [#allocation5], 1 }
 0x397   :  { %1155 = vsyncpa [#allocation8], 1 }

</bundles_post_ra>
